<compile_context>
chip_gen: v7x
topology: tpu7x:2x2x1
jax: 0.10.0
libtpu: 0.0.40
codegen_flags: <defaults>
</compile_context>

<pallas_src>
from functools import partial

import jax
import jax.numpy as jnp
from jax.experimental import pallas as pl
from jax.experimental.pallas import tpu as pltpu

LANE = 128


def _cnn_kernel(emb_ref, w3_ref, w4_ref, w5_ref, bcat_ref, wc_ref, bc_ref,
                out_ref, *, filter_sizes, n_filters):
    Bt, S, D = emb_ref.shape
    F = n_filters

    # (Bt, S, D) -> (Bt*S, D): one lane-dense 2-D MXU operand (M = Bt*S).
    emb2d = emb_ref[...].reshape(Bt * S, D)                       # bf16

    pooled = []
    for w_ref, fs in zip((w3_ref, w4_ref, w5_ref), filter_sizes):
        # One MXU pass per filter size: (Bt*S, D) @ (D, fs*F) -> f32.
        y = jnp.dot(emb2d, w_ref[...], preferred_element_type=jnp.float32)

        # Conv as shift/add: out[t] = sum_j y_j[t + j].  Shifts are sublane
        # rolls (XLU slot, otherwise idle) of lane-aligned F-wide slabs; rows
        # that wrap past the valid range are masked to -inf before the max.
        acc = y[:, 0:F]                                           # j = 0 term
        for j in range(1, fs):
            acc = acc + pltpu.roll(y[:, j * F:(j + 1) * F],
                                   shift=Bt * S - j, axis=0)      # roll by -j

        acc = acc.reshape(Bt, S, F)
        Lout = S - fs + 1
        t_idx = jax.lax.broadcasted_iota(jnp.int32, (Bt, S, F), 1)
        acc = jnp.where(t_idx < Lout, acc, -jnp.inf)
        pooled.append(jnp.max(acc, axis=1))                       # (Bt, F) f32

    # Bias + ReLU once on the pooled tensor (both commute with the max-pool).
    cat = jnp.maximum(jnp.concatenate(pooled, axis=1) + bcat_ref[...], 0.0)

    # Dropout p=0.0 -> identity.  TODO(synk): dropout mask omitted since p=0.0.

    # Lane-dense classifier (weights padded to 128 output lanes).
    logits = jnp.dot(cat.astype(jnp.bfloat16), wc_ref[...],
                     preferred_element_type=jnp.float32)          # (Bt, Cp)
    out_ref[...] = (logits + bc_ref[...]).astype(out_ref.dtype)


def cnn_forward(params, text, length, *, b_tile=8):
    """text: (S, B) int32 token ids (PyTorch seq-first convention)."""
    del length  # the reference forward pools over the full (unmasked) sequence
    ids = text.T.astype(jnp.int32)                                # (B, S)
    B, S = ids.shape
    filter_sizes = params["filter_sizes"]
    D = params["embedding"].shape[1]
    F = params["w3"].shape[-1]
    C = params["cls_b"].shape[-1]
    Cp = pl.cdiv(C, LANE) * LANE

    # Pad batch to a sublane-friendly tile multiple; sliced back at the end.
    Bp = pl.cdiv(B, b_tile) * b_tile
    ids_p = jnp.pad(ids, ((0, Bp - B), (0, 0)))

    # Direct bf16 embedding gather (exact row selection, no accumulation).
    # TODO(synk): at production vocab, keep the table in HBM (pl.ANY) and DMA
    # per-token rows inside the kernel via scalar-prefetched ids.
    emb = jnp.take(params["embedding"].astype(jnp.bfloat16), ids_p, axis=0)

    # Per-filter-size fused weights, lane-dense (D, fs*F) bf16.
    w_groups = []
    for name, fs in zip(("w3", "w4", "w5"), filter_sizes):
        w = params[name]                                          # (fs, D, F)
        w_groups.append(jnp.concatenate([w[j] for j in range(fs)],
                                        axis=-1).astype(jnp.bfloat16))
    b_cat = jnp.concatenate([params["b3"], params["b4"], params["b5"]],
                            axis=-1).astype(jnp.float32)          # (1, 3F)
    wc_pad = jnp.pad(params["cls_w"],
                     ((0, 0), (0, Cp - C))).astype(jnp.bfloat16)  # (3F, Cp)
    bc_pad = jnp.pad(params["cls_b"],
                     ((0, 0), (0, Cp - C))).astype(jnp.float32)   # (1, Cp)

    kernel = partial(_cnn_kernel, filter_sizes=filter_sizes, n_filters=F)

    out = pl.pallas_call(
        kernel,
        out_shape=jax.ShapeDtypeStruct((Bp, Cp), jnp.float32),
        grid_spec=pltpu.PrefetchScalarGridSpec(
            num_scalar_prefetch=0,
            grid=(Bp // b_tile,),
            in_specs=[
                # Batch-tiled activations.
                pl.BlockSpec((b_tile, S, D), lambda i: (i, 0, 0)),
                # Weights/biases: constant index_map -> VMEM-resident across
                # grid steps (no re-DMA per batch tile).
                pl.BlockSpec((D, filter_sizes[0] * F), lambda i: (0, 0)),
                pl.BlockSpec((D, filter_sizes[1] * F), lambda i: (0, 0)),
                pl.BlockSpec((D, filter_sizes[2] * F), lambda i: (0, 0)),
                pl.BlockSpec((1, len(filter_sizes) * F), lambda i: (0, 0)),
                pl.BlockSpec((len(filter_sizes) * F, Cp), lambda i: (0, 0)),
                pl.BlockSpec((1, Cp), lambda i: (0, 0)),
            ],
            out_specs=pl.BlockSpec((b_tile, Cp), lambda i: (i, 0)),
        ),
        compiler_params=pltpu.CompilerParams(
            # Batch tiles are independent -> shard across v7x's 2 TensorCores.
            dimension_semantics=("parallel",),
            # Toy footprint is ~1.5 MiB; 32 MiB is safe on every generation.
            # TODO(synk): at production sizes pick b_tile so b_tile*S >= 256
            # (MXU row fill on v6e/v7x) and roughly halve it for v7x (64 MiB
            # physical VMEM).
            vmem_limit_bytes=32 * 1024 * 1024,
        ),
    )(emb, w_groups[0], w_groups[1], w_groups[2], b_cat, wc_pad, bc_pad)
    return out[:B, :C]


def cnn_reference(params, text, length):
    """Pure-JAX (f32) reference mirroring the PyTorch forward."""
    del length
    x = text.T
    emb = jnp.take(params["embedding"], x, axis=0)                # (B, S, D)
    B, S, D = emb.shape
    pooled = []
    for fs, (w, b) in zip(params["filter_sizes"],
                          [(params["w3"], params["b3"]),
                           (params["w4"], params["b4"]),
                           (params["w5"], params["b5"])]):
        Lout = S - fs + 1
        acc = jnp.zeros((B, Lout, w.shape[-1]), jnp.float32)
        for j in range(fs):
            acc = acc + jnp.einsum("bld,df->blf", emb[:, j:j + Lout, :], w[j])
        acc = jnp.maximum(acc + b, 0.0)
        pooled.append(jnp.max(acc, axis=1))
    cat = jnp.concatenate(pooled, axis=1)
    return cat @ params["cls_w"] + params["cls_b"]


if __name__ == "__main__":
    # Small deterministic config consistent with the module.
    vocab_size, embedding_dim, n_classes = 50, 128, 8
    n_filters, filter_sizes = 128, (3, 4, 5)
    seq_len, batch = 16, 4

    key = jax.random.PRNGKey(0)
    ks = jax.random.split(key, 10)

    def init(k, shape, scale=0.1):
        return (scale * jax.random.normal(k, shape)).astype(jnp.float32)

    params = {
        # nn.Embedding(vocab_size, embedding_dim)
        "embedding": init(ks[0], (vocab_size, embedding_dim)),
        # Conv2d weights (F, 1, fs, D) pre-transposed to (fs, D, F)
        "w3": init(ks[1], (3, embedding_dim, n_filters)),
        "b3": init(ks[2], (1, n_filters)),
        "w4": init(ks[3], (4, embedding_dim, n_filters)),
        "b4": init(ks[4], (1, n_filters)),
        "w5": init(ks[5], (5, embedding_dim, n_filters)),
        "b5": init(ks[6], (1, n_filters)),
        # nn.Linear(3*F, C) weight pre-transposed to (3F, C)
        "cls_w": init(ks[7], (len(filter_sizes) * n_filters, n_classes)),
        "cls_b": init(ks[8], (1, n_classes)),
        "filter_sizes": filter_sizes,
    }

    text = jax.random.randint(ks[9], (seq_len, batch), 0, vocab_size,
                              dtype=jnp.int32)
    length = jnp.full((batch,), seq_len, dtype=jnp.int32)

    out = cnn_forward(params, text, length)
    jax.block_until_ready(out)
    assert out.shape == (batch, n_classes)

    ref = cnn_reference(params, text, length)
    # bf16 MXU inputs with f32 accumulation -> slightly looser tolerance.
    assert jnp.allclose(out, ref, rtol=2e-2, atol=2e-2), "mismatch vs reference"

    print("KERNEL_OK")
</pallas_src>

<mosaic_0001>
module attributes {stable_mosaic.version = 11 : i64} {
  func.func @_cnn_kernel(%arg0: i32, %arg1: memref<8x16x128xbf16, #tpu.memory_space<vmem>>, %arg2: memref<128x384xbf16, #tpu.memory_space<vmem>>, %arg3: memref<128x512xbf16, #tpu.memory_space<vmem>>, %arg4: memref<128x640xbf16, #tpu.memory_space<vmem>>, %arg5: memref<1x384xf32, #tpu.memory_space<vmem>>, %arg6: memref<384x128xbf16, #tpu.memory_space<vmem>>, %arg7: memref<1x128xf32, #tpu.memory_space<vmem>>, %arg8: memref<8x128xf32, #tpu.memory_space<vmem>>) attributes {dimension_semantics = [#tpu.dimension_semantics<parallel>], iteration_bounds = array<i64: 1>, scalar_prefetch = 0 : i64, scratch_operands = 0 : i64, tpu.core_type = #tpu.core_type<tc>, window_params = [{transform_indices = @transform_0, window_bounds = array<i64: 8, 16, 128>}, {pipeline_mode = #tpu.pipeline_mode<synchronous>, transform_indices = @transform_1, window_bounds = array<i64: 128, 384>}, {pipeline_mode = #tpu.pipeline_mode<synchronous>, transform_indices = @transform_2, window_bounds = array<i64: 128, 512>}, {pipeline_mode = #tpu.pipeline_mode<synchronous>, transform_indices = @transform_3, window_bounds = array<i64: 128, 640>}, {pipeline_mode = #tpu.pipeline_mode<synchronous>, transform_indices = @transform_4, window_bounds = array<i64: 1, 384>}, {pipeline_mode = #tpu.pipeline_mode<synchronous>, transform_indices = @transform_5, window_bounds = array<i64: 384, 128>}, {pipeline_mode = #tpu.pipeline_mode<synchronous>, transform_indices = @transform_6, window_bounds = array<i64: 1, 128>}, {transform_indices = @transform_7, window_bounds = array<i64: 8, 128>}]} {
    %c0 = arith.constant 0 : index
    %c0_0 = arith.constant 0 : index
    %c0_1 = arith.constant 0 : index
    %0 = vector.load %arg1[%c0, %c0_0, %c0_1] : memref<8x16x128xbf16, #tpu.memory_space<vmem>>, vector<8x16x128xbf16>
    %1 = vector.shape_cast %0 : vector<8x16x128xbf16> to vector<128x128xbf16>
    %c0_2 = arith.constant 0 : index
    %c0_3 = arith.constant 0 : index
    %2 = vector.load %arg2[%c0_2, %c0_3] : memref<128x384xbf16, #tpu.memory_space<vmem>>, vector<128x384xbf16>
    %cst = arith.constant dense<0.000000e+00> : vector<128x384xf32>
    %3 = tpu.matmul %1, %2, %cst {dimension_numbers = #tpu.dot_dimension_numbers<[1], [0], [0], [1], [0, 0, 1, 1], [], []>} : vector<128x128xbf16>, vector<128x384xbf16>, vector<128x384xf32> -> vector<128x384xf32>
    %4 = vector.extract_strided_slice %3 {offsets = [0, 0], sizes = [128, 128], strides = [1, 1]} : vector<128x384xf32> to vector<128x128xf32>
    %5 = vector.extract_strided_slice %3 {offsets = [0, 128], sizes = [128, 128], strides = [1, 1]} : vector<128x384xf32> to vector<128x128xf32>
    %c127_i32 = arith.constant 127 : i32
    %6 = tpu.dynamic_rotate %5 by %c127_i32 dim 0 : vector<128x128xf32>, i32 -> vector<128x128xf32>
    %7 = arith.addf %4, %6 : vector<128x128xf32>
    %8 = vector.extract_strided_slice %3 {offsets = [0, 256], sizes = [128, 128], strides = [1, 1]} : vector<128x384xf32> to vector<128x128xf32>
    %c126_i32 = arith.constant 126 : i32
    %9 = tpu.dynamic_rotate %8 by %c126_i32 dim 0 : vector<128x128xf32>, i32 -> vector<128x128xf32>
    %10 = arith.addf %7, %9 : vector<128x128xf32>
    %11 = vector.shape_cast %10 : vector<128x128xf32> to vector<8x16x128xf32>
    %12 = tpu.iota {dimensions = array<i32: 1>} : vector<8x16x128xi32>
    %c14_i32 = arith.constant 14 : i32
    %13 = vector.broadcast %c14_i32 : i32 to vector<8x16x128xi32>
    %14 = arith.cmpi slt, %12, %13 : vector<8x16x128xi32>
    %cst_4 = arith.constant 0xFF800000 : f32
    %15 = vector.broadcast %cst_4 : f32 to vector<8x16x128xf32>
    %16 = arith.select %14, %11, %15 : vector<8x16x128xi1>, vector<8x16x128xf32>
    %cst_5 = arith.constant dense<0xFF800000> : vector<8x128xf32>
    %17 = vector.multi_reduction <maximumf>, %16, %cst_5 [1] : vector<8x16x128xf32> to vector<8x128xf32>
    %c0_6 = arith.constant 0 : index
    %c0_7 = arith.constant 0 : index
    %18 = vector.load %arg3[%c0_6, %c0_7] : memref<128x512xbf16, #tpu.memory_space<vmem>>, vector<128x512xbf16>
    %cst_8 = arith.constant dense<0.000000e+00> : vector<128x512xf32>
    %19 = tpu.matmul %1, %18, %cst_8 {dimension_numbers = #tpu.dot_dimension_numbers<[1], [0], [0], [1], [0, 0, 1, 1], [], []>} : vector<128x128xbf16>, vector<128x512xbf16>, vector<128x512xf32> -> vector<128x512xf32>
    %20 = vector.extract_strided_slice %19 {offsets = [0, 0], sizes = [128, 128], strides = [1, 1]} : vector<128x512xf32> to vector<128x128xf32>
    %21 = vector.extract_strided_slice %19 {offsets = [0, 128], sizes = [128, 128], strides = [1, 1]} : vector<128x512xf32> to vector<128x128xf32>
    %c127_i32_9 = arith.constant 127 : i32
    %22 = tpu.dynamic_rotate %21 by %c127_i32_9 dim 0 : vector<128x128xf32>, i32 -> vector<128x128xf32>
    %23 = arith.addf %20, %22 : vector<128x128xf32>
    %24 = vector.extract_strided_slice %19 {offsets = [0, 256], sizes = [128, 128], strides = [1, 1]} : vector<128x512xf32> to vector<128x128xf32>
    %c126_i32_10 = arith.constant 126 : i32
    %25 = tpu.dynamic_rotate %24 by %c126_i32_10 dim 0 : vector<128x128xf32>, i32 -> vector<128x128xf32>
    %26 = arith.addf %23, %25 : vector<128x128xf32>
    %27 = vector.extract_strided_slice %19 {offsets = [0, 384], sizes = [128, 128], strides = [1, 1]} : vector<128x512xf32> to vector<128x128xf32>
    %c125_i32 = arith.constant 125 : i32
    %28 = tpu.dynamic_rotate %27 by %c125_i32 dim 0 : vector<128x128xf32>, i32 -> vector<128x128xf32>
    %29 = arith.addf %26, %28 : vector<128x128xf32>
    %30 = vector.shape_cast %29 : vector<128x128xf32> to vector<8x16x128xf32>
    %31 = tpu.iota {dimensions = array<i32: 1>} : vector<8x16x128xi32>
    %c13_i32 = arith.constant 13 : i32
    %32 = vector.broadcast %c13_i32 : i32 to vector<8x16x128xi32>
    %33 = arith.cmpi slt, %31, %32 : vector<8x16x128xi32>
    %cst_11 = arith.constant 0xFF800000 : f32
    %34 = vector.broadcast %cst_11 : f32 to vector<8x16x128xf32>
    %35 = arith.select %33, %30, %34 : vector<8x16x128xi1>, vector<8x16x128xf32>
    %cst_12 = arith.constant dense<0xFF800000> : vector<8x128xf32>
    %36 = vector.multi_reduction <maximumf>, %35, %cst_12 [1] : vector<8x16x128xf32> to vector<8x128xf32>
    %c0_13 = arith.constant 0 : index
    %c0_14 = arith.constant 0 : index
    %37 = vector.load %arg4[%c0_13, %c0_14] : memref<128x640xbf16, #tpu.memory_space<vmem>>, vector<128x640xbf16>
    %cst_15 = arith.constant dense<0.000000e+00> : vector<128x640xf32>
    %38 = tpu.matmul %1, %37, %cst_15 {dimension_numbers = #tpu.dot_dimension_numbers<[1], [0], [0], [1], [0, 0, 1, 1], [], []>} : vector<128x128xbf16>, vector<128x640xbf16>, vector<128x640xf32> -> vector<128x640xf32>
    %39 = vector.extract_strided_slice %38 {offsets = [0, 0], sizes = [128, 128], strides = [1, 1]} : vector<128x640xf32> to vector<128x128xf32>
    %40 = vector.extract_strided_slice %38 {offsets = [0, 128], sizes = [128, 128], strides = [1, 1]} : vector<128x640xf32> to vector<128x128xf32>
    %c127_i32_16 = arith.constant 127 : i32
    %41 = tpu.dynamic_rotate %40 by %c127_i32_16 dim 0 : vector<128x128xf32>, i32 -> vector<128x128xf32>
    %42 = arith.addf %39, %41 : vector<128x128xf32>
    %43 = vector.extract_strided_slice %38 {offsets = [0, 256], sizes = [128, 128], strides = [1, 1]} : vector<128x640xf32> to vector<128x128xf32>
    %c126_i32_17 = arith.constant 126 : i32
    %44 = tpu.dynamic_rotate %43 by %c126_i32_17 dim 0 : vector<128x128xf32>, i32 -> vector<128x128xf32>
    %45 = arith.addf %42, %44 : vector<128x128xf32>
    %46 = vector.extract_strided_slice %38 {offsets = [0, 384], sizes = [128, 128], strides = [1, 1]} : vector<128x640xf32> to vector<128x128xf32>
    %c125_i32_18 = arith.constant 125 : i32
    %47 = tpu.dynamic_rotate %46 by %c125_i32_18 dim 0 : vector<128x128xf32>, i32 -> vector<128x128xf32>
    %48 = arith.addf %45, %47 : vector<128x128xf32>
    %49 = vector.extract_strided_slice %38 {offsets = [0, 512], sizes = [128, 128], strides = [1, 1]} : vector<128x640xf32> to vector<128x128xf32>
    %c124_i32 = arith.constant 124 : i32
    %50 = tpu.dynamic_rotate %49 by %c124_i32 dim 0 : vector<128x128xf32>, i32 -> vector<128x128xf32>
    %51 = arith.addf %48, %50 : vector<128x128xf32>
    %52 = vector.shape_cast %51 : vector<128x128xf32> to vector<8x16x128xf32>
    %53 = tpu.iota {dimensions = array<i32: 1>} : vector<8x16x128xi32>
    %c12_i32 = arith.constant 12 : i32
    %54 = vector.broadcast %c12_i32 : i32 to vector<8x16x128xi32>
    %55 = arith.cmpi slt, %53, %54 : vector<8x16x128xi32>
    %cst_19 = arith.constant 0xFF800000 : f32
    %56 = vector.broadcast %cst_19 : f32 to vector<8x16x128xf32>
    %57 = arith.select %55, %52, %56 : vector<8x16x128xi1>, vector<8x16x128xf32>
    %cst_20 = arith.constant dense<0xFF800000> : vector<8x128xf32>
    %58 = vector.multi_reduction <maximumf>, %57, %cst_20 [1] : vector<8x16x128xf32> to vector<8x128xf32>
    %59 = tpu.concatenate %17, %36, %58 in 1 : vector<8x128xf32>, vector<8x128xf32>, vector<8x128xf32> -> vector<8x384xf32>
    %c0_21 = arith.constant 0 : index
    %c0_22 = arith.constant 0 : index
    %60 = vector.load %arg5[%c0_21, %c0_22] : memref<1x384xf32, #tpu.memory_space<vmem>>, vector<1x384xf32>
    %61 = vector.broadcast %60 : vector<1x384xf32> to vector<8x384xf32>
    %62 = arith.addf %59, %61 : vector<8x384xf32>
    %cst_23 = arith.constant 0.000000e+00 : f32
    %63 = vector.broadcast %cst_23 : f32 to vector<8x384xf32>
    %64 = arith.maximumf %62, %63 : vector<8x384xf32>
    %65 = arith.truncf %64 : vector<8x384xf32> to vector<8x384xbf16>
    %c0_24 = arith.constant 0 : index
    %c0_25 = arith.constant 0 : index
    %66 = vector.load %arg6[%c0_24, %c0_25] : memref<384x128xbf16, #tpu.memory_space<vmem>>, vector<384x128xbf16>
    %cst_26 = arith.constant dense<0.000000e+00> : vector<8x128xf32>
    %67 = tpu.matmul %65, %66, %cst_26 {dimension_numbers = #tpu.dot_dimension_numbers<[1], [0], [0], [1], [0, 0, 1, 1], [], []>} : vector<8x384xbf16>, vector<384x128xbf16>, vector<8x128xf32> -> vector<8x128xf32>
    %c0_27 = arith.constant 0 : index
    %c0_28 = arith.constant 0 : index
    %68 = vector.load %arg7[%c0_27, %c0_28] : memref<1x128xf32, #tpu.memory_space<vmem>>, vector<1x128xf32>
    %69 = vector.broadcast %68 : vector<1x128xf32> to vector<8x128xf32>
    %70 = arith.addf %67, %69 : vector<8x128xf32>
    %c0_29 = arith.constant 0 : index
    %c0_30 = arith.constant 0 : index
    %71 = vector.load %arg8[%c0_29, %c0_30] : memref<8x128xf32, #tpu.memory_space<vmem>>, vector<8x128xf32>
    tpu.vector_store %arg8[%c0_29, %c0_30], %70 {strides = array<i32>} : memref<8x128xf32, #tpu.memory_space<vmem>>, vector<8x128xf32>,
    return
  }
  func.func @transform_0(%arg0: i32) -> (i32, i32, i32) {
    %c0_i32 = arith.constant 0 : i32
    %c0_i32_0 = arith.constant 0 : i32
    %c0_i32_1 = arith.constant 0 : i32
    return %arg0, %c0_i32, %c0_i32_0 : i32, i32, i32
  }
  func.func @transform_1(%arg0: i32) -> (i32, i32) {
    %c0_i32 = arith.constant 0 : i32
    %c0_i32_0 = arith.constant 0 : i32
    %c0_i32_1 = arith.constant 0 : i32
    return %c0_i32, %c0_i32_0 : i32, i32
  }
  func.func @transform_2(%arg0: i32) -> (i32, i32) {
    %c0_i32 = arith.constant 0 : i32
    %c0_i32_0 = arith.constant 0 : i32
    %c0_i32_1 = arith.constant 0 : i32
    return %c0_i32, %c0_i32_0 : i32, i32
  }
  func.func @transform_3(%arg0: i32) -> (i32, i32) {
    %c0_i32 = arith.constant 0 : i32
    %c0_i32_0 = arith.constant 0 : i32
    %c0_i32_1 = arith.constant 0 : i32
    return %c0_i32, %c0_i32_0 : i32, i32
  }
  func.func @transform_4(%arg0: i32) -> (i32, i32) {
    %c0_i32 = arith.constant 0 : i32
    %c0_i32_0 = arith.constant 0 : i32
    %c0_i32_1 = arith.constant 0 : i32
    return %c0_i32, %c0_i32_0 : i32, i32
  }
  func.func @transform_5(%arg0: i32) -> (i32, i32) {
    %c0_i32 = arith.constant 0 : i32
    %c0_i32_0 = arith.constant 0 : i32
    %c0_i32_1 = arith.constant 0 : i32
    return %c0_i32, %c0_i32_0 : i32, i32
  }
  func.func @transform_6(%arg0: i32) -> (i32, i32) {
    %c0_i32 = arith.constant 0 : i32
    %c0_i32_0 = arith.constant 0 : i32
    %c0_i32_1 = arith.constant 0 : i32
    return %c0_i32, %c0_i32_0 : i32, i32
  }
  func.func @transform_7(%arg0: i32) -> (i32, i32) {
    %c0_i32 = arith.constant 0 : i32
    %c0_i32_0 = arith.constant 0 : i32
    return %arg0, %c0_i32 : i32, i32
  }
}

</mosaic_0001>

<bundles_post_ra>
// kernel: tpu_custom_call.1
= control target key start
LH: loop header
LB: loop body
LE: loop exit
PB: predicated region body
PF: predicated region fallthrough
CT: control target
= control target key end

     0   :  { %12 = vsyncpa [#allocation3], 0  ;;  %s4037_s0 = inlined_call_operand.hbm [shape: bf16[8,16,128], index: 0, kind: input, shape index: {}]   ;;  %s4038_s1 = inlined_call_operand.hbm [shape: bf16[128,384], index: 1, kind: input, shape index: {}]   ;;  %s4039_s2 = inlined_call_operand.hbm [shape: bf16[128,512], index: 2, kind: input, shape index: {}]   ;;  %s4040_s3 = inlined_call_operand.hbm [shape: bf16[128,640], index: 3, kind: input, shape index: {}]   ;;  %s4041_s4 = inlined_call_operand.vmem [shape: f32[1,384], index: 4, kind: input, shape index: {}]   ;;  %s4042_s5 = inlined_call_operand.hbm [shape: bf16[384,128], index: 5, kind: input, shape index: {}]   ;;  %s4043_s6 = inlined_call_operand.vmem [shape: f32[1,128], index: 6, kind: input, shape index: {}]   ;;  %s4044_s7 = inlined_call_operand.hbm [shape: f32[8,128], index: 7, kind: output, shape index: {}]  }
   0x1   :  { %13 = vsyncpa [#allocation6], 0 }
   0x2   :  { %14 = vsyncpa [#allocation9], 0 }
   0x3   :  { %15 = vsyncpa [#allocation4], 0  ;;  %s3167_s24 = smov [#allocation5]   ;;  %s3027_s28 = scalar_lea.hbm %s4038_s1, 3072 }
   0x4   :  { %s33_s25 = sshll.u32 %s3167_s24, 4  ;;  %p3028_p0 = scmp.ne.s32.totalorder %s4038_s1, %s3027_s28  ;;  %s34_s25 = int_to_ptr.vmem [resolvable:$true] %s33_s25 }
   0x5   :  { %p3031_p1 = scmp.lt.u32.totalorder %s3027_s28, %s4038_s1 }
   0x7   :  { %p3033_p2 = pnand %p3031_p1, %p3028_p0 }
   0x9   :  { %3036 = shalt.err (!%p3033_p2)
}
   0xa   :  { %s3037_s10 = scalar_lea.vmem %s34_s25, 3072  ;;  %p3042_p4 = scmp.lt.s32.totalorder %s34_s25, %s34_s25 }
   0xb   :  { %p3038_p3 = scmp.ne.s32.totalorder %s34_s25, %s3037_s10  ;;  %p3043_p5 = scmp.lt.s32.totalorder %s3037_s10, %s3037_s10 }
   0xd   :  { %p3044_p6 = por %p3043_p5, %p3042_p4 }
   0xf   :  { %p3045_p7 = pnand %p3044_p6, %p3038_p3 }
  0x11   :  { %3048 = shalt.err (!%p3045_p7)
}
  0x12   :  { %s3168_s11 = smov 192   ;;  %s3169_s12 = smov 12  }
  0x13   :  { %39 = dma.hbm_to_vmem [thread:$0]  %s4038_s1, 3072, %s34_s25, [#allocation6], %s3168_s11, %s3168_s11, %s3169_s12  }
  0x14   :  { %s3170_s15 = smov [#allocation8]   ;;  %s3049_s19 = scalar_lea.hbm %s4040_s3, 5120 }
  0x15   :  { %s57_s16 = sshll.u32 %s3170_s15, 4  ;;  %p3050_p8 = scmp.ne.s32.totalorder %s4040_s3, %s3049_s19  ;;  %s58_s16 = int_to_ptr.vmem [resolvable:$true] %s57_s16 }
  0x16   :  { %p3053_p9 = scmp.lt.u32.totalorder %s3049_s19, %s4040_s3 }
  0x18   :  { %p3055_p10 = pnand %p3053_p9, %p3050_p8 }
  0x1a   :  { %3058 = shalt.err (!%p3055_p10)
}
  0x1b   :  { %s3059_s24 = scalar_lea.vmem %s58_s16, 5120  ;;  %p3064_p12 = scmp.lt.s32.totalorder %s58_s16, %s58_s16 }
  0x1c   :  { %p3060_p11 = scmp.ne.s32.totalorder %s58_s16, %s3059_s24  ;;  %p3065_p13 = scmp.lt.s32.totalorder %s3059_s24, %s3059_s24 }
  0x1e   :  { %p3066_p0 = por %p3065_p13, %p3064_p12 }
  0x20   :  { %p3067_p1 = pnand %p3066_p0, %p3060_p11 }
  0x22   :  { %3070 = shalt.err (!%p3067_p1)
}
  0x23   :  { %s3171_s1 = smov 320   ;;  %s3172_s25 = smov 20  }
  0x24   :  { %63 = dma.hbm_to_vmem [thread:$0]  %s4040_s3, 5120, %s58_s16, [#allocation9], %s3171_s1, %s3171_s1, %s3172_s25  }
  0x25   :  { %s3173_s28 = smov [#allocation2]   ;;  %s3071_s9 = scalar_lea.hbm %s4037_s0, 1024 }
  0x26   :  { %s21_s29 = sshll.u32 %s3173_s28, 4  ;;  %p3072_p2 = scmp.ne.s32.totalorder %s4037_s0, %s3071_s9  ;;  %s22_s29 = int_to_ptr.vmem [resolvable:$true] %s21_s29 }
  0x27   :  { %p3075_p3 = scmp.lt.u32.totalorder %s3071_s9, %s4037_s0 }
  0x29   :  { %p3077_p4 = pnand %p3075_p3, %p3072_p2 }
  0x2b   :  { %3080 = shalt.err (!%p3077_p4)
}
  0x2c   :  { %s3081_s14 = scalar_lea.vmem %s22_s29, 1024  ;;  %p3086_p6 = scmp.lt.s32.totalorder %s22_s29, %s22_s29 }
  0x2d   :  { %p3082_p5 = scmp.ne.s32.totalorder %s22_s29, %s3081_s14  ;;  %p3087_p7 = scmp.lt.s32.totalorder %s3081_s14, %s3081_s14 }
  0x2f   :  { %p3088_p8 = por %p3087_p7, %p3086_p6 }
  0x31   :  { %p3089_p9 = pnand %p3088_p8, %p3082_p5 }
  0x33   :  { %3092 = shalt.err (!%p3089_p9)
}
  0x34   :  { %s3174_s3 = smov 64   ;;  %s3175_s15 = smov 4  }
  0x35   :  { %27 = dma.hbm_to_vmem [thread:$0]  %s4037_s0, 1024, %s22_s29, [#allocation3], %s3174_s3, %s3174_s3, %s3175_s15  }
  0x36   :  { %s3176_s18 = smov [#allocation7]   ;;  %s3093_s22 = scalar_lea.hbm %s4039_s2, 4096 }
  0x37   :  { %s45_s19 = sshll.u32 %s3176_s18, 4  ;;  %p3094_p10 = scmp.ne.s32.totalorder %s4039_s2, %s3093_s22  ;;  %s46_s19 = int_to_ptr.vmem [resolvable:$true] %s45_s19 }
  0x38   :  { %p3097_p11 = scmp.lt.u32.totalorder %s3093_s22, %s4039_s2 }
  0x3a   :  { %p3099_p12 = pnand %p3097_p11, %p3094_p10 }
  0x3c   :  { %3102 = shalt.err (!%p3099_p12)
}
  0x3d   :  { %s3103_s26 = scalar_lea.vmem %s46_s19, 4096  ;;  %p3108_p0 = scmp.lt.s32.totalorder %s46_s19, %s46_s19 }
  0x3e   :  { %p3104_p13 = scmp.ne.s32.totalorder %s46_s19, %s3103_s26  ;;  %p3109_p1 = scmp.lt.s32.totalorder %s3103_s26, %s3103_s26 }
  0x40   :  { %p3110_p2 = por %p3109_p1, %p3108_p0 }
  0x42   :  { %p3111_p3 = pnand %p3110_p2, %p3104_p13 }
  0x44   :  { %3114 = shalt.err (!%p3111_p3)
}
  0x45   :  { %s3177_s0 = smov 256   ;;  %s3178_s27 = smov 16  }
  0x46   :  { %51 = dma.hbm_to_vmem [thread:$0]  %s4039_s2, 4096, %s46_s19, [#allocation6], %s3177_s0, %s3177_s0, %s3178_s27  }
  0x47   :  { %s3179_s30 = smov [#allocation10]   ;;  %s3115_s11 = scalar_lea.hbm %s4042_s5, 3072 }
  0x48   :  { %s71_s8 = sshll.u32 %s3179_s30, 4  ;;  %p3116_p4 = scmp.ne.s32.totalorder %s4042_s5, %s3115_s11  ;;  %s72_s8 = int_to_ptr.vmem [resolvable:$true] %s71_s8 }
  0x49   :  { %p3119_p5 = scmp.lt.u32.totalorder %s3115_s11, %s4042_s5 }
  0x4b   :  { %p3121_p6 = pnand %p3119_p5, %p3116_p4 }
  0x4d   :  { %3124 = shalt.err (!%p3121_p6)
}
  0x4e   :  { %s3125_s17 = scalar_lea.vmem %s72_s8, 3072  ;;  %p3130_p8 = scmp.lt.s32.totalorder %s72_s8, %s72_s8 }
  0x4f   :  { %p3126_p7 = scmp.ne.s32.totalorder %s72_s8, %s3125_s17  ;;  %p3131_p9 = scmp.lt.s32.totalorder %s3125_s17, %s3125_s17 }
  0x51   :  { %p3132_p10 = por %p3131_p9, %p3130_p8 }
  0x53   :  { %p3133_p11 = pnand %p3132_p10, %p3126_p7 }
  0x55   :  { %3136 = shalt.err (!%p3133_p11)
}
  0x56   :  { %77 = dma.hbm_to_vmem [thread:$0]  %s4042_s5, 3072, %s72_s8, [#allocation9], %s3174_s3, %s3174_s3, %s3175_s15  }
  0x57   :  { %3159 = dma.done.wait [#allocation3], 1024  }
  0x58   :  { %3160 = vsyncadd [#allocation3], 4294966272 }
  0x59   :  { %3161 = dma.done.wait [#allocation6], 7168  }
  0x5a   :  { %3162 = vsyncadd [#allocation6], 4294960128 }
  0x5b   :  { %3163 = dma.done.wait [#allocation9], 8192  }
  0x5c   :  { %3164 = vsyncadd [#allocation9], 4294959104  ;;  %v3180_v0 = vmov 0   ;;  %v2859_v1 = vld [vmem:[#allocation5 + $0x4] ss:$12 sps:$4 sm:$0xff]   ;;  %v3294_v28 = vld [vmem:[#allocation2 + $0x8] sm:$0xff]  }
  0x5d   :  { %352 = vmatprep.mubr.bf16.mxu0 %v3180_v0  ;;  %v2861_v2 = vld [vmem:[#allocation5 + $0x8] ss:$12 sps:$4 sm:$0xff]   ;;  %320 = vmatprep.subr.bf16.mxu0 %v2859_v1  ;;  %v2862_v3 = vld [vmem:[#allocation5] ss:$12 sps:$4 sm:$0xff]   ;;  %v2866_v6 = vld [vmem:[#allocation5 + $0x18] ss:$12 sps:$4 sm:$0xff]  }
  0x5e   :  { %2758 = vmatprep.subr.bf16.mxu1 %v2861_v2  ;;  %v2863_v4 = vld [vmem:[#allocation5 + $0x1c] ss:$12 sps:$4 sm:$0xff]   ;;  %321 = vmatpush1.bf16.msra.mxu0 %v2862_v3  ;;  %v2865_v5 = vld [vmem:[#allocation5 + $0x20] ss:$12 sps:$4 sm:$0xff]   ;;  %v2869_v8 = vld [vmem:[#allocation5 + $0x38] ss:$12 sps:$4 sm:$0xff]  }
  0x5f   :  { %2759 = vmatpush3.bf16.msra.mxu1 %v2861_v2  ;;  %322 = vmatprep.subr.bf16.mxu0 %v2863_v4  ;;  %v2867_v7 = vld [vmem:[#allocation5 + $0x34] ss:$12 sps:$4 sm:$0xff]   ;;  %v2870_v9 = vld [vmem:[#allocation5 + $0x30] ss:$12 sps:$4 sm:$0xff]   ;;  %v2871_v10 = vld [vmem:[#allocation5 + $0x4c] ss:$12 sps:$4 sm:$0xff]  }
  0x60   :  { %2760 = vmatprep.subr.bf16.mxu1 %v2865_v5  ;;  %v2873_v11 = vld [vmem:[#allocation5 + $0x50] ss:$12 sps:$4 sm:$0xff]   ;;  %v2874_v12 = vld [vmem:[#allocation5 + $0x48] ss:$12 sps:$4 sm:$0xff]   ;;  %v2878_v15 = vld [vmem:[#allocation5 + $0x60] ss:$12 sps:$4 sm:$0xff]  }
  0x61   :  { %v2875_v13 = vld [vmem:[#allocation5 + $0x64] ss:$12 sps:$4 sm:$0xff]   ;;  %v2877_v14 = vld [vmem:[#allocation5 + $0x68] ss:$12 sps:$4 sm:$0xff]   ;;  %v2881_v17 = vld [vmem:[#allocation5 + $0x80] ss:$12 sps:$4 sm:$0xff]  }
  0x62   :  { %323 = vmatpush1.bf16.msra.mxu0 %v2866_v6  ;;  %v2879_v16 = vld [vmem:[#allocation5 + $0x7c] ss:$12 sps:$4 sm:$0xff]   ;;  %v3291_v18 = vld [vmem:[#allocation2] sm:$0xff]   ;;  %v2887_v23 = vld [vmem:[#allocation5 + $0xac] ss:$12 sps:$4 sm:$0xff]   ;;  %vm2196_vm3 = vcmask 1041409  }
  0x63   :  { %2761 = vmatpush3.bf16.msra.mxu1 %v2865_v5  ;;  %324 = vmatprep.subr.bf16.mxu0 %v2867_v7  ;;  %v2882_v19 = vld [vmem:[#allocation5 + $0x78] ss:$12 sps:$4 sm:$0xff]   ;;  %v2883_v20 = vld [vmem:[#allocation5 + $0x94] ss:$12 sps:$4 sm:$0xff]   ;;  %v2886_v22 = vld [vmem:[#allocation5 + $0x90] ss:$12 sps:$4 sm:$0xff]  }
  0x64   :  { %2762 = vmatprep.subr.bf16.mxu1 %v2869_v8  ;;  %v2885_v21 = vld [vmem:[#allocation5 + $0x98] ss:$12 sps:$4 sm:$0xff]   ;;  %2774 = vmatprep.mubr.bf16.mxu1 %v3291_v18  ;;  %v2889_v24 = vld [vmem:[#allocation5 + $0xb0] ss:$12 sps:$4 sm:$0xff]   ;;  %v2890_v25 = vld [vmem:[#allocation5 + $0xa8] ss:$12 sps:$4 sm:$0xff]  }
  0x65   :  { %v2895_v26 = vld [vmem:[#allocation7 + $0x4] ss:$16 sps:$4 sm:$0xff]   ;;  %v2898_v27 = vld [vmem:[#allocation7 + $0xc] ss:$16 sps:$4 sm:$0xff]   ;;  %v2893_v29 = vld [vmem:[#allocation7] ss:$16 sps:$4 sm:$0xff]  }
  0x66   :  { %325 = vmatpush1.bf16.msra.mxu0 %v2870_v9  ;;  %v2896_v30 = vld [vmem:[#allocation7 + $0x8] ss:$16 sps:$4 sm:$0xff]   ;;  %v2901_v31 = vld [vmem:[#allocation7 + $0x24] ss:$16 sps:$4 sm:$0xff]   ;;  %v2909_v33 = vld [vmem:[#allocation7 + $0x2c] ss:$16 sps:$4 sm:$0xff]  }
  0x67   :  { %2763 = vmatpush3.bf16.msra.mxu1 %v2869_v8  ;;  %326 = vmatprep.subr.bf16.mxu0 %v2871_v10  ;;  %v3296_v32 = vld [vmem:[#allocation2 + $0x10] sm:$0xff]   ;;  %v2907_v36 = vld [vmem:[#allocation7 + $0x28] ss:$16 sps:$4 sm:$0xff]   ;;  %v2920_v37 = vld [vmem:[#allocation7 + $0x4c] ss:$16 sps:$4 sm:$0xff]   ;;  %vm2198_vm4 = vcmask 1042434  }
  0x68   :  { %2764 = vmatprep.subr.bf16.mxu1 %v2873_v11  ;;  %v2899_v34 = vld [vmem:[#allocation7 + $0x20] ss:$16 sps:$4 sm:$0xff]   ;;  %v2906_v35 = vld [vmem:[#allocation7 + $0x44] ss:$16 sps:$4 sm:$0xff]   ;;  %v3302_v38 = vld [vmem:[#allocation2 + $0x18] sm:$0xff]   ;;  %vm2200_vm5 = vcmask 1043459  }
  0x69   :  { %v2904_v39 = vld [vmem:[#allocation7 + $0x40] ss:$16 sps:$4 sm:$0xff]   ;;  %v2912_v40 = vld [vmem:[#allocation7 + $0x64] ss:$16 sps:$4 sm:$0xff]   ;;  %v2918_v42 = vld [vmem:[#allocation7 + $0x48] ss:$16 sps:$4 sm:$0xff]  }
  0x6a   :  { %327 = vmatpush1.bf16.msra.mxu0 %v2874_v12  ;;  %v3304_v41 = vld [vmem:[#allocation2 + $0x20] sm:$0xff]   ;;  %v2931_v43 = vld [vmem:[#allocation7 + $0x6c] ss:$16 sps:$4 sm:$0xff]   ;;  %v2929_v46 = vld [vmem:[#allocation7 + $0x68] ss:$16 sps:$4 sm:$0xff]   ;;  %vm2202_vm6 = vcmask 1044484  }
  0x6b   :  { %2765 = vmatpush3.bf16.msra.mxu1 %v2873_v11  ;;  %328 = vmatprep.subr.bf16.mxu0 %v2875_v13  ;;  %v2910_v44 = vld [vmem:[#allocation7 + $0x60] ss:$16 sps:$4 sm:$0xff]   ;;  %v2917_v45 = vld [vmem:[#allocation7 + $0x84] ss:$16 sps:$4 sm:$0xff]   ;;  %v3310_v47 = vld [vmem:[#allocation2 + $0x28] sm:$0xff]   ;;  %vm2204_vm8 = vcmask 1045509  }
  0x6c   :  { %2766 = vmatprep.subr.bf16.mxu1 %v2877_v14  ;;  %v2915_v48 = vld [vmem:[#allocation7 + $0x80] ss:$16 sps:$4 sm:$0xff]   ;;  %v2923_v49 = vld [vmem:[#allocation7 + $0xa4] ss:$16 sps:$4 sm:$0xff]   ;;  %v2937_v51 = vld [vmem:[#allocation7 + $0x8c] ss:$16 sps:$4 sm:$0xff]  }
  0x6d   :  { %v3312_v50 = vld [vmem:[#allocation2 + $0x30] sm:$0xff]   ;;  %v2935_v53 = vld [vmem:[#allocation7 + $0x88] ss:$16 sps:$4 sm:$0xff]   ;;  %v2943_v54 = vld [vmem:[#allocation7 + $0xac] ss:$16 sps:$4 sm:$0xff]   ;;  %vm2206_vm10 = vcmask 1046534  }
  0x6e   :  { %329 = vmatpush1.bf16.msra.mxu0 %v2878_v15  ;;  %v2921_v52 = vld [vmem:[#allocation7 + $0xa0] ss:$16 sps:$4 sm:$0xff]   ;;  %v2928_v55 = vld [vmem:[#allocation7 + $0xc4] ss:$16 sps:$4 sm:$0xff]   ;;  %v3318_v56 = vld [vmem:[#allocation2 + $0x38] sm:$0xff]   ;;  %vm2208_vm11 = vcmask 1047559  }
  0x6f   :  { %2767 = vmatpush3.bf16.msra.mxu1 %v2877_v14  ;;  %330 = vmatprep.subr.bf16.mxu0 %v2879_v16  ;;  %v2926_v57 = vld [vmem:[#allocation7 + $0xc0] ss:$16 sps:$4 sm:$0xff]   ;;  %v2934_v58 = vld [vmem:[#allocation7 + $0xe4] ss:$16 sps:$4 sm:$0xff]   ;;  %v2941_v59 = vld [vmem:[#allocation7 + $0xa8] ss:$16 sps:$4 sm:$0xff]  }
  0x70   :  { %2768 = vmatprep.subr.bf16.mxu1 %v2881_v17  ;;  %v2949_v60 = vld [vmem:[#allocation7 + $0xcc] ss:$16 sps:$4 sm:$0xff]   ;;  %v2932_v61 = vld [vmem:[#allocation7 + $0xe0] ss:$16 sps:$4 sm:$0xff]   ;;  %v2940_v62 = vld [vmem:[#allocation8 + $0x4] ss:$20 sps:$4 sm:$0xff]  }
  0x71   :  { %v2947_v63 = vld [vmem:[#allocation7 + $0xc8] ss:$16 sps:$4 sm:$0xff]   ;;  %v2938_v1 = vld [vmem:[#allocation8] ss:$20 sps:$4 sm:$0xff]   ;;  %v2955_v3 = vld [vmem:[#allocation7 + $0xec] ss:$16 sps:$4 sm:$0xff]  }
  0x72   :  { %331 = vmatpush1.bf16.msra.mxu0 %v2882_v19  ;;  %v2946_v2 = vld [vmem:[#allocation8 + $0x2c] ss:$20 sps:$4 sm:$0xff]   ;;  %v2944_v4 = vld [vmem:[#allocation8 + $0x28] ss:$20 sps:$4 sm:$0xff]   ;;  %v2950_v8 = vld [vmem:[#allocation8 + $0x50] ss:$20 sps:$4 sm:$0xff]  }
  0x73   :  { %2769 = vmatpush3.bf16.msra.mxu1 %v2881_v17  ;;  %332 = vmatprep.subr.bf16.mxu0 %v2883_v20  ;;  %v2953_v5 = vld [vmem:[#allocation7 + $0xe8] ss:$16 sps:$4 sm:$0xff]   ;;  %v2961_v6 = vld [vmem:[#allocation8 + $0xc] ss:$20 sps:$4 sm:$0xff]   ;;  %v2958_v9 = vld [vmem:[#allocation8 + $0x7c] ss:$20 sps:$4 sm:$0xff]  }
  0x74   :  { %2770 = vmatprep.subr.bf16.mxu1 %v2885_v21  ;;  %v2952_v7 = vld [vmem:[#allocation8 + $0x54] ss:$20 sps:$4 sm:$0xff]   ;;  %v2956_v10 = vld [vmem:[#allocation8 + $0x78] ss:$20 sps:$4 sm:$0xff]   ;;  %v2974_v16 = vld [vmem:[#allocation8 + $0xf0] ss:$20 sps:$4 sm:$0xff]  }
  0x75   :  { %v2964_v11 = vld [vmem:[#allocation8 + $0xa4] ss:$20 sps:$4 sm:$0xff]   ;;  %v2962_v12 = vld [vmem:[#allocation8 + $0xa0] ss:$20 sps:$4 sm:$0xff]   ;;  %v2968_v14 = vld [vmem:[#allocation8 + $0xc8] ss:$20 sps:$4 sm:$0xff]  }
  0x76   :  { %333 = vmatpush1.bf16.msra.mxu0 %v2886_v22  ;;  %v2970_v13 = vld [vmem:[#allocation8 + $0xcc] ss:$20 sps:$4 sm:$0xff]   ;;  %v2976_v15 = vld [vmem:[#allocation8 + $0xf4] ss:$20 sps:$4 sm:$0xff]   ;;  %v2982_v17 = vld [vmem:[#allocation8 + $0x11c] ss:$20 sps:$4 sm:$0xff]  }
  0x77   :  { %2771 = vmatpush3.bf16.msra.mxu1 %v2885_v21  ;;  %334 = vmatprep.subr.bf16.mxu0 %v2887_v23  ;;  %v2980_v19 = vld [vmem:[#allocation8 + $0x118] ss:$20 sps:$4 sm:$0xff]   ;;  %v2986_v20 = vld [vmem:[#allocation8 + $0x10] ss:$20 sps:$4 sm:$0xff]   ;;  %v2959_v21 = vld [vmem:[#allocation8 + $0x8] ss:$20 sps:$4 sm:$0xff]  }
  0x78   :  { %2772 = vmatprep.subr.bf16.mxu1 %v2889_v24  ;;  %v2967_v22 = vld [vmem:[#allocation8 + $0x34] ss:$20 sps:$4 sm:$0xff]   ;;  %v2965_v23 = vld [vmem:[#allocation8 + $0x30] ss:$20 sps:$4 sm:$0xff]   ;;  %vm3182_vm12 = vmmov 0   ;;  %s3183_s19 = smov [#allocation11]  }
  0x79   :  { %s2555_s20 = sshll.u32 %s3183_s19, 4  ;;  %s2556_s20 = int_to_ptr.vmem [resolvable:$true] %s2555_s20 }
  0x7a   :  { %335 = vmatpush1.bf16.msra.mxu0 %v2890_v25  ;;  %v2971_v25 = vld [vmem:[#allocation8 + $0x58] ss:$20 sps:$4 sm:$0xff]   ;;  %s3137_s21 = scalar_lea.vmem %s2556_s20, 128  ;;  %p3142_p13 = scmp.lt.s32.totalorder %s2556_s20, %s2556_s20 }
  0x7b   :  { %2773 = vmatpush3.bf16.msra.mxu1 %v2889_v24  ;;  %1010 = vmatprep.subr.bf16.mxu0 %v2898_v27  ;;  %v2973_v24 = vld [vmem:[#allocation8 + $0x5c] ss:$20 sps:$4 sm:$0xff]   ;;  %v2977_v27 = vld [vmem:[#allocation8 + $0x80] ss:$20 sps:$4 sm:$0xff]   ;;  %p3138_p12 = scmp.ne.s32.totalorder %s2556_s20, %s3137_s21  ;;  %p3143_p0 = scmp.lt.s32.totalorder %s3137_s21, %s3137_s21 }
  0x7c   :  { %897 = vmatprep.subr.bf16.mxu1 %v2895_v26  ;;  %v2979_v26 = vld [vmem:[#allocation8 + $0x84] ss:$20 sps:$4 sm:$0xff]  }
  0x7d   :  { %353 = vmatmul.mubr.bf16.vlgmr.msra.gmra.mrb[0].mxu0 %v3291_v18  ;;  %p3144_p1 = por %p3143_p0, %p3142_p13 }
  0x7e   :  { %2775 = vmatmul.mubr.bf16.vlgmr.msra.gmra.mrb[0].mxu1 %v3294_v28  ;;  %1011 = vmatpush1.bf16.msra.mxu0 %v2896_v30  ;;  %v2983_v30 = vld [vmem:[#allocation8 + $0xa8] ss:$20 sps:$4 sm:$0xff]  }
  0x7f   :  { %898 = vmatpush1.bf16.msra.mxu1 %v2893_v29  ;;  %362 = vmatprep.mubr.bf16.mxu0 %v3180_v0  ;;  %v2985_v29 = vld [vmem:[#allocation8 + $0xac] ss:$20 sps:$4 sm:$0xff]   ;;  %p3145_p2 = pnand %p3144_p1, %p3138_p12 }
  0x80   :  { %899 = vmatprep.subr.bf16.mxu1 %v2901_v31  ;;  %2778 = vmatprep.mubr.bf16.mxu1 %v3296_v32  ;;  %v2989_v31 = vld [vmem:[#allocation8 + $0xd4] ss:$20 sps:$4 sm:$0xff]  }
  0x81   :  { %1012 = vmatprep.subr.bf16.mxu0 %v2909_v33  ;;  %v2987_v33 = vld [vmem:[#allocation8 + $0xd0] ss:$20 sps:$4 sm:$0xff]  }
  0x82   :  { %1013 = vmatpush1.bf16.msra.mxu0 %v2907_v36  ;;  %v2997_v36 = vld [vmem:[#allocation8 + $0x124] ss:$20 sps:$4 sm:$0xff]  }
  0x83   :  { %900 = vmatpush1.bf16.msra.mxu1 %v2899_v34  ;;  %1014 = vmatprep.subr.bf16.mxu0 %v2920_v37  ;;  %v2993_v34 = vld [vmem:[#allocation8 + $0xfc] ss:$20 sps:$4 sm:$0xff]   ;;  %v2995_v37 = vld [vmem:[#allocation8 + $0x120] ss:$20 sps:$4 sm:$0xff]  }
  0x84   :  { %901 = vmatprep.subr.bf16.mxu1 %v2906_v35  ;;  %v2991_v35 = vld [vmem:[#allocation8 + $0xf8] ss:$20 sps:$4 sm:$0xff]  }
  0x85   :  { %363 = vmatmul.mubr.bf16.gmra.mrb[4].mxu0 %v3294_v28 }
  0x86   :  { %2779 = vmatmul.mubr.bf16.gmra.mrb[4].mxu1 %v3302_v38  ;;  %372 = vmatprep.mubr.bf16.mxu0 %v3180_v0 }
  0x87   :  { %902 = vmatpush1.bf16.msra.mxu1 %v2904_v39  ;;  %2782 = vmatprep.mubr.bf16.mxu1 %v3304_v41  ;;  %v2990_v39 = vld [vmem:[#allocation8 + $0x38] ss:$20 sps:$4 sm:$0xff]  }
  0x88   :  { %903 = vmatprep.subr.bf16.mxu1 %v2912_v40  ;;  %1015 = vmatpush1.bf16.msra.mxu0 %v2918_v42  ;;  %v2994_v40 = vld [vmem:[#allocation8 + $0x60] ss:$20 sps:$4 sm:$0xff]   ;;  %v2998_v42 = vld [vmem:[#allocation8 + $0x88] ss:$20 sps:$4 sm:$0xff]  }
  0x89   :  { %1016 = vmatprep.subr.bf16.mxu0 %v2931_v43  ;;  %v2999_v43 = vld [vmem:[#allocation8 + $0xb0] ss:$20 sps:$4 sm:$0xff]  }
  0x8b   :  { %904 = vmatpush1.bf16.msra.mxu1 %v2910_v44  ;;  %v3000_v44 = vld [vmem:[#allocation8 + $0xd8] ss:$20 sps:$4 sm:$0xff]  }
  0x8c   :  { %905 = vmatprep.subr.bf16.mxu1 %v2917_v45  ;;  %1017 = vmatpush1.bf16.msra.mxu0 %v2929_v46  ;;  %v3001_v45 = vld [vmem:[#allocation8 + $0x100] ss:$20 sps:$4 sm:$0xff]   ;;  %v3002_v46 = vld [vmem:[#allocation8 + $0x128] ss:$20 sps:$4 sm:$0xff]  }
  0x8d   :  { %373 = vmatmul.mubr.bf16.gmra.mrb[8].mxu0 %v3296_v32  ;;  %1018 = vmatprep.subr.bf16.mxu0 %v2937_v51 }
  0x8e   :  { %2783 = vmatmul.mubr.bf16.gmra.mrb[8].mxu1 %v3310_v47  ;;  %382 = vmatprep.mubr.bf16.mxu0 %v3180_v0 }
  0x8f   :  { %906 = vmatpush1.bf16.msra.mxu1 %v2915_v48  ;;  %2786 = vmatprep.mubr.bf16.mxu1 %v3312_v50  ;;  %v3006_v48 = vld [vmem:[#allocation10 + $0x8] sm:$0xff]  }
  0x90   :  { %907 = vmatprep.subr.bf16.mxu1 %v2923_v49  ;;  %1019 = vmatpush1.bf16.msra.mxu0 %v2935_v53 }
  0x91   :  { %1020 = vmatprep.subr.bf16.mxu0 %v2943_v54 }
  0x93   :  { %908 = vmatpush1.bf16.msra.mxu1 %v2921_v52 }
  0x94   :  { %909 = vmatprep.subr.bf16.mxu1 %v2928_v55  ;;  %1021 = vmatpush1.bf16.msra.mxu0 %v2941_v59  ;;  %v3007_v55 = vld [vmem:[#allocation10 + $0x50] sm:$0xff]  }
  0x95   :  { %383 = vmatmul.mubr.bf16.gmra.mrb[12].mxu0 %v3302_v38  ;;  %1022 = vmatprep.subr.bf16.mxu0 %v2949_v60  ;;  %v3008_v59 = vld [vmem:[#allocation10 + $0x10] sm:$0xff]  }
  0x96   :  { %2787 = vmatmul.mubr.bf16.gmra.mrb[12].mxu1 %v3318_v56  ;;  %392 = vmatprep.mubr.bf16.mxu0 %v3180_v0 }
  0x97   :  { %910 = vmatpush1.bf16.msra.mxu1 %v2926_v57  ;;  %929 = vmatprep.mubr.bf16.mxu1 %v3180_v0 }
  0x98   :  { %911 = vmatprep.subr.bf16.mxu1 %v2934_v58  ;;  %1023 = vmatpush1.bf16.msra.mxu0 %v2947_v63 }
  0x99   :  { %1024 = vmatprep.subr.bf16.mxu0 %v2955_v3 }
  0x9b   :  { %912 = vmatpush1.bf16.msra.mxu1 %v2932_v61 }
  0x9c   :  { %1598 = vmatprep.subr.bf16.mxu1 %v2940_v62  ;;  %1025 = vmatpush1.bf16.msra.mxu0 %v2953_v5 }
  0x9d   :  { %393 = vmatmul.mubr.bf16.gmra.mrb[16].mxu0 %v3304_v41  ;;  %1711 = vmatprep.subr.bf16.mxu0 %v2961_v6  ;;  %v3010_v6 = vld [vmem:[#allocation10 + $0x18] sm:$0xff]  }
  0x9e   :  { %930 = vmatmul.mubr.bf16.vlgmr.msra.gmra.mrb[16].mxu1 %v3291_v18  ;;  %402 = vmatprep.mubr.bf16.mxu0 %v3180_v0 }
  0x9f   :  { %1599 = vmatpush1.bf16.msra.mxu1 %v2938_v1  ;;  %939 = vmatprep.mubr.bf16.mxu1 %v3180_v0 }
  0xa0   :  { %1600 = vmatprep.subr.bf16.mxu1 %v2946_v2 }
  0xa3   :  { %1601 = vmatpush1.bf16.msra.mxu1 %v2944_v4  ;;  %v3009_v4 = vld [vmem:[#allocation10 + $0x58] sm:$0xff]  }
  0xa4   :  { %1602 = vmatprep.subr.bf16.mxu1 %v2952_v7 }
  0xa5   :  { %403 = vmatmul.mubr.bf16.gmra.mrb[20].mxu0 %v3310_v47 }
  0xa6   :  { %940 = vmatmul.mubr.bf16.gmra.mrb[20].mxu1 %v3294_v28  ;;  %412 = vmatprep.mubr.bf16.mxu0 %v3180_v0 }
  0xa7   :  { %949 = vmatprep.mubr.bf16.mxu1 %v3180_v0  ;;  %1603 = vmatpush1.bf16.msra.mxu1 %v2950_v8 }
  0xa8   :  { %1604 = vmatprep.subr.bf16.mxu1 %v2958_v9 }
  0xab   :  { %1605 = vmatpush1.bf16.msra.mxu1 %v2956_v10 }
  0xac   :  { %1606 = vmatprep.subr.bf16.mxu1 %v2964_v11 }
  0xad   :  { %413 = vmatmul.mubr.bf16.gmra.mrb[24].mxu0 %v3312_v50 }
  0xae   :  { %950 = vmatmul.mubr.bf16.gmra.mrb[24].mxu1 %v3296_v32  ;;  %422 = vmatprep.mubr.bf16.mxu0 %v3180_v0 }
  0xaf   :  { %959 = vmatprep.mubr.bf16.mxu1 %v3180_v0  ;;  %1607 = vmatpush1.bf16.msra.mxu1 %v2962_v12 }
  0xb0   :  { %1608 = vmatprep.subr.bf16.mxu1 %v2970_v13 }
  0xb3   :  { %1609 = vmatpush1.bf16.msra.mxu1 %v2968_v14 }
  0xb4   :  { %1610 = vmatprep.subr.bf16.mxu1 %v2976_v15 }
  0xb5   :  { %423 = vmatmul.mubr.bf16.gmra.mrb[28].mxu0 %v3318_v56 }
  0xb6   :  { %960 = vmatmul.mubr.bf16.gmra.mrb[28].mxu1 %v3302_v38  ;;  %1042 = vmatprep.mubr.bf16.mxu0 %v3180_v0 }
  0xb7   :  { %969 = vmatprep.mubr.bf16.mxu1 %v3180_v0  ;;  %1611 = vmatpush1.bf16.msra.mxu1 %v2974_v16 }
  0xb8   :  { %1612 = vmatprep.subr.bf16.mxu1 %v2982_v17 }
  0xbb   :  { %1613 = vmatpush1.bf16.msra.mxu1 %v2980_v19  ;;  %v3011_v19 = vld [vmem:[#allocation10 + $0x60] sm:$0xff]  }
  0xbc   :  { %2790 = vmatprep.subr.bf16.mxu1 %v2986_v20 }
  0xbd   :  { %1043 = vmatmul.mubr.bf16.vlgmr.msra.gmra.mrb[32].mxu0 %v3291_v18 }
  0xbe   :  { %970 = vmatmul.mubr.bf16.gmra.mrb[32].mxu1 %v3304_v41  ;;  %1712 = vmatpush1.bf16.msra.mxu0 %v2959_v21 }
  0xbf   :  { %979 = vmatprep.mubr.bf16.mxu1 %v3180_v0  ;;  %1052 = vmatprep.mubr.bf16.mxu0 %v3180_v0 }
  0xc0   :  { %1713 = vmatprep.subr.bf16.mxu0 %v2967_v22 }
  0xc2   :  { %1714 = vmatpush1.bf16.msra.mxu0 %v2965_v23  ;;  %v3012_v23 = vld [vmem:[#allocation10 + $0x20] sm:$0xff]  }
  0xc3   :  { %1715 = vmatprep.subr.bf16.mxu0 %v2973_v24 }
  0xc5   :  { %1053 = vmatmul.mubr.bf16.gmra.mrb[36].mxu0 %v3294_v28 }
  0xc6   :  { %980 = vmatmul.mubr.bf16.gmra.mrb[36].mxu1 %v3310_v47  ;;  %1062 = vmatprep.mubr.bf16.mxu0 %v3180_v0 }
  0xc7   :  { %989 = vmatprep.mubr.bf16.mxu1 %v3180_v0  ;;  %1716 = vmatpush1.bf16.msra.mxu0 %v2971_v25 }
  0xc8   :  { %1717 = vmatprep.subr.bf16.mxu0 %v2979_v26 }
  0xcb   :  { %1718 = vmatpush1.bf16.msra.mxu0 %v2977_v27 }
  0xcc   :  { %1719 = vmatprep.subr.bf16.mxu0 %v2985_v29 }
  0xcd   :  { %1063 = vmatmul.mubr.bf16.gmra.mrb[40].mxu0 %v3296_v32 }
  0xce   :  { %990 = vmatmul.mubr.bf16.gmra.mrb[40].mxu1 %v3312_v50  ;;  %1072 = vmatprep.mubr.bf16.mxu0 %v3180_v0 }
  0xcf   :  { %999 = vmatprep.mubr.bf16.mxu1 %v3180_v0  ;;  %1720 = vmatpush1.bf16.msra.mxu0 %v2983_v30 }
  0xd0   :  { %1721 = vmatprep.subr.bf16.mxu0 %v2989_v31 }
  0xd3   :  { %1722 = vmatpush1.bf16.msra.mxu0 %v2987_v33 }
  0xd4   :  { %1723 = vmatprep.subr.bf16.mxu0 %v2993_v34 }
  0xd5   :  { %1073 = vmatmul.mubr.bf16.gmra.mrb[44].mxu0 %v3302_v38 }
  0xd6   :  { %1000 = vmatmul.mubr.bf16.gmra.mrb[44].mxu1 %v3318_v56  ;;  %1082 = vmatprep.mubr.bf16.mxu0 %v3180_v0 }
  0xd7   :  { %1630 = vmatprep.mubr.bf16.mxu1 %v3180_v0  ;;  %1724 = vmatpush1.bf16.msra.mxu0 %v2991_v35  ;;  %v3013_v35 = vld [vmem:[#allocation10 + $0x68] sm:$0xff]  }
  0xd8   :  { %1725 = vmatprep.subr.bf16.mxu0 %v2997_v36 }
  0xdb   :  { %1726 = vmatpush1.bf16.msra.mxu0 %v2995_v37 }
  0xdd   :  { %1083 = vmatmul.mubr.bf16.gmra.mrb[48].mxu0 %v3304_v41 }
  0xde   :  { %1631 = vmatmul.mubr.bf16.vlgmr.msra.gmra.mrb[48].mxu1 %v3291_v18  ;;  %1092 = vmatprep.mubr.bf16.mxu0 %v3180_v0 }
  0xdf   :  { %2791 = vmatpush3.bf16.msra.mxu1 %v2986_v20  ;;  %1640 = vmatprep.mubr.bf16.mxu1 %v3180_v0 }
  0xe0   :  { %2792 = vmatprep.subr.bf16.mxu1 %v2990_v39 }
  0xe3   :  { %2793 = vmatpush3.bf16.msra.mxu1 %v2990_v39  ;;  %v3014_v39 = vld [vmem:[#allocation10 + $0x28] sm:$0xff]  }
  0xe4   :  { %2794 = vmatprep.subr.bf16.mxu1 %v2994_v40 }
  0xe5   :  { %1093 = vmatmul.mubr.bf16.gmra.mrb[52].mxu0 %v3310_v47 }
  0xe6   :  { %1641 = vmatmul.mubr.bf16.gmra.mrb[52].mxu1 %v3294_v28  ;;  %1102 = vmatprep.mubr.bf16.mxu0 %v3180_v0 }
  0xe7   :  { %1650 = vmatprep.mubr.bf16.mxu1 %v3180_v0  ;;  %2795 = vmatpush3.bf16.msra.mxu1 %v2994_v40 }
  0xe8   :  { %2796 = vmatprep.subr.bf16.mxu1 %v2998_v42 }
  0xeb   :  { %2797 = vmatpush3.bf16.msra.mxu1 %v2998_v42 }
  0xec   :  { %2798 = vmatprep.subr.bf16.mxu1 %v2999_v43 }
  0xed   :  { %1103 = vmatmul.mubr.bf16.gmra.mrb[56].mxu0 %v3312_v50 }
  0xee   :  { %1651 = vmatmul.mubr.bf16.gmra.mrb[56].mxu1 %v3296_v32  ;;  %1112 = vmatprep.mubr.bf16.mxu0 %v3180_v0 }
  0xef   :  { %1660 = vmatprep.mubr.bf16.mxu1 %v3180_v0  ;;  %2799 = vmatpush3.bf16.msra.mxu1 %v2999_v43 }
  0xf0   :  { %2800 = vmatprep.subr.bf16.mxu1 %v3000_v44 }
  0xf3   :  { %2801 = vmatpush3.bf16.msra.mxu1 %v3000_v44 }
  0xf4   :  { %2802 = vmatprep.subr.bf16.mxu1 %v3001_v45 }
  0xf5   :  { %1113 = vmatmul.mubr.bf16.gmra.mrb[60].mxu0 %v3318_v56 }
  0xf6   :  { %1661 = vmatmul.mubr.bf16.gmra.mrb[60].mxu1 %v3302_v38  ;;  %1743 = vmatprep.mubr.bf16.mxu0 %v3180_v0 }
  0xf7   :  { %1670 = vmatprep.mubr.bf16.mxu1 %v3180_v0  ;;  %2803 = vmatpush3.bf16.msra.mxu1 %v3001_v45 }
  0xf8   :  { %2804 = vmatprep.subr.bf16.mxu1 %v3002_v46 }
  0xfb   :  { %2805 = vmatpush3.bf16.msra.mxu1 %v3002_v46 }
  0xfd   :  { %1744 = vmatmul.mubr.bf16.vlgmr.msra.gmra.mrb[64].mxu0 %v3291_v18 }
  0xfe   :  { %1671 = vmatmul.mubr.bf16.gmra.mrb[64].mxu1 %v3304_v41  ;;  %1753 = vmatprep.mubr.bf16.mxu0 %v3180_v0 }
  0xff   :  { %1680 = vmatprep.mubr.bf16.mxu1 %v3180_v0 }
 0x105   :  { %1754 = vmatmul.mubr.bf16.gmra.mrb[68].mxu0 %v3294_v28 }
 0x106   :  { %1681 = vmatmul.mubr.bf16.gmra.mrb[68].mxu1 %v3310_v47  ;;  %1763 = vmatprep.mubr.bf16.mxu0 %v3180_v0 }
 0x107   :  { %1690 = vmatprep.mubr.bf16.mxu1 %v3180_v0 }
 0x10d   :  { %1764 = vmatmul.mubr.bf16.gmra.mrb[72].mxu0 %v3296_v32 }
 0x10e   :  { %1691 = vmatmul.mubr.bf16.gmra.mrb[72].mxu1 %v3312_v50  ;;  %1773 = vmatprep.mubr.bf16.mxu0 %v3180_v0 }
 0x10f   :  { %1700 = vmatprep.mubr.bf16.mxu1 %v3180_v0 }
 0x115   :  { %1774 = vmatmul.mubr.bf16.gmra.mrb[76].mxu0 %v3302_v38 }
 0x116   :  { %1701 = vmatmul.mubr.bf16.gmra.mrb[76].mxu1 %v3318_v56  ;;  %1783 = vmatprep.mubr.bf16.mxu0 %v3180_v0 }
 0x117   :  { %2806 = vmatprep.mubr.bf16.mxu1 %v3291_v18  ;;  %v546_v18 = vlaneseq }
 0x11d   :  { %1784 = vmatmul.mubr.bf16.gmra.mrb[80].mxu0 %v3304_v41 }
 0x11e   :  { %2807 = vmatmul.mubr.bf16.vlgmr.msra.gmra.mrb[80].mxu1 %v3294_v28  ;;  %1793 = vmatprep.mubr.bf16.mxu0 %v3180_v0  ;;  %v3003_v28 = vld [vmem:[#allocation10 + $0x40] sm:$0xff]  }
 0x11f   :  { %2810 = vmatprep.mubr.bf16.mxu1 %v3296_v32  ;;  %v3004_v32 = vld [vmem:[#allocation10] sm:$0xff]   ;;  %2727 = vmatprep.subr.bf16.mxu0 %v3003_v28 }
 0x120   :  { %2728 = vmatpush3.bf16.msra.mxu0 %v3004_v32 }
 0x125   :  { %1794 = vmatmul.mubr.bf16.gmra.mrb[84].mxu0 %v3310_v47 }
 0x126   :  { %2811 = vmatmul.mubr.bf16.gmra.mrb[84].mxu1 %v3302_v38  ;;  %1803 = vmatprep.mubr.bf16.mxu0 %v3180_v0  ;;  %v3402_v38 = vshrl.u32 %v546_v18, 7 }
 0x127   :  { %2814 = vmatprep.mubr.bf16.mxu1 %v3304_v41  ;;  %v3005_v41 = vld [vmem:[#allocation10 + $0x48] sm:$0xff]  }
 0x128   :  { %2729 = vmatprep.subr.bf16.mxu0 %v3005_v41  ;;  %vm597_vm0 = vcmp.lt.s32.totalorder %v3402_v38, 6  ;;  %vm548_vm1 = vcmp.lt.s32.totalorder %v3402_v38, 7  ;;  %v3425_v14 = vadd.s32 8, %v3402_v38  ;;  %vm1235_vm7 = vcmp.lt.s32.totalorder %v3402_v38, 5 }
 0x129   :  { %2730 = vmatpush3.bf16.msra.mxu0 %v3006_v48  ;;  %vm2081_vm13 = vcmp.lt.s32.totalorder %v3402_v38, 4 }
 0x12a   :  { %2731 = vmatprep.subr.bf16.mxu0 %v3007_v55  ;;  %vm632_vm2 = vcmp.lt.s32.totalorder %v3425_v14, 14  ;;  %v3016_v55 = vld [vmem:[#allocation10 + $0x30] sm:$0xff]   ;;  %vm1269_vm9 = vcmp.lt.s32.totalorder %v3425_v14, 13  ;;  %vm2115_vm14 = vcmp.lt.s32.totalorder %v3425_v14, 12 }
 0x12d   :  { %1804 = vmatmul.mubr.bf16.gmra.mrb[88].mxu0 %v3312_v50 }
 0x12e   :  { %2815 = vmatmul.mubr.bf16.gmra.mrb[88].mxu1 %v3310_v47  ;;  %1813 = vmatprep.mubr.bf16.mxu0 %v3180_v0 }
 0x12f   :  { %2818 = vmatprep.mubr.bf16.mxu1 %v3312_v50  ;;  %2732 = vmatpush3.bf16.msra.mxu0 %v3008_v59 }
 0x130   :  { %2733 = vmatprep.subr.bf16.mxu0 %v3009_v4 }
 0x133   :  { %2734 = vmatpush3.bf16.msra.mxu0 %v3010_v6 }
 0x134   :  { %2735 = vmatprep.subr.bf16.mxu0 %v3011_v19 }
 0x135   :  { %1814 = vmatmul.mubr.bf16.gmra.mrb[92].mxu0 %v3318_v56 }
 0x136   :  { %2819 = vmatmul.mubr.bf16.gmra.mrb[92].mxu1 %v3318_v56 }
 0x137   :  { %2736 = vmatpush3.bf16.msra.mxu0 %v3012_v23 }
 0x138   :  { %2737 = vmatprep.subr.bf16.mxu0 %v3013_v35 }
 0x13b   :  { %2738 = vmatpush3.bf16.msra.mxu0 %v3014_v39 }
 0x150   :  { %v354_v49 = vpop.f32.mrb[0].mxu0 }
 0x151   :  { %v2776_v51 = vpop.f32.mrb[0].mxu1  ;;  %v3404_v0 = vpop.f32.mrb[1].mxu0 }
 0x152   :  { %v583_v47 = vrot.slane %v2776_v51, 2  ;;  %v3406_v50 = vpop.f32.mrb[1].mxu1  ;;  %v358_v53 = vpop.f32.mrb[2].mxu0  ;;  %v530_v60 = vrot.slane %v3404_v0, 1  ;;  %v3015_v51 = vld [vmem:[#allocation10 + $0x70] sm:$0xff]  }
 0x153   :  { %v581_v52 = vrot.slane %v3406_v50, 2  ;;  %v2777_v54 = vpop.f32.mrb[2].mxu1  ;;  %v360_v57 = vpop.f32.mrb[3].mxu0  ;;  %2739 = vmatprep.subr.bf16.mxu0 %v3015_v51 }
 0x154   :  { %v584_v56 = vrot.slane %v2777_v54, 2  ;;  %v470_v58 = vpop.f32.mrb[3].mxu1  ;;  %v531_v61 = vrot.slane %v360_v57, 1  ;;  %2740 = vmatpush3.bf16.msra.mxu0 %v3016_v55 }
 0x155   :  { %v582_v62 = vrot.slane %v470_v58, 2 }
 0x156   :  { %v610_v63 = vsel %vm597_vm0, %v583_v47, %v584_v56  ;;  %v563_v1 = vsel %vm548_vm1, %v530_v60, %v531_v61 }
 0x157   :  { %v611_v2 = vsel %vm597_vm0, %v582_v62, %v583_v47  ;;  %v612_v3 = vsel %vm597_vm0, %v581_v52, %v582_v62  ;;  %v565_v5 = vadd.f32 %v563_v1, %v354_v49 }
 0x158   :  { %v364_v7 = vpop.f32.mrb[4].mxu0 }
 0x159   :  { %v2780_v8 = vpop.f32.mrb[4].mxu1  ;;  %v614_v9 = vadd.f32 %v612_v3, %v565_v5  ;;  %v366_v11 = vpop.f32.mrb[5].mxu0  ;;  %v3017_v3 = vld [vmem:[#allocation10 + $0x78] sm:$0xff]  }
 0x15a   :  { %v587_v10 = vrot.slane %v2780_v8, 2  ;;  %v483_v12 = vpop.f32.mrb[5].mxu1  ;;  %v532_v13 = vrot.slane %v366_v11, 1  ;;  %v368_v16 = vpop.f32.mrb[6].mxu0  ;;  %v3018_v8 = vld [vmem:[#allocation10 + $0x38] sm:$0xff]   ;;  %2741 = vmatprep.subr.bf16.mxu0 %v3017_v3 }
 0x15b   :  { %v585_v15 = vrot.slane %v483_v12, 2  ;;  %v2781_v17 = vpop.f32.mrb[6].mxu1  ;;  %v370_v21 = vpop.f32.mrb[7].mxu0  ;;  %2742 = vmatpush3.bf16.msra.mxu0 %v3018_v8 }
 0x15c   :  { %v588_v20 = vrot.slane %v2781_v17, 2  ;;  %v486_v22 = vpop.f32.mrb[7].mxu1  ;;  %v562_v24 = vsel %vm548_vm1, %v531_v61, %v532_v13  ;;  %v533_v26 = vrot.slane %v370_v21, 1 }
 0x15d   :  { %v609_v25 = vsel %vm597_vm0, %v584_v56, %v585_v15  ;;  %v586_v27 = vrot.slane %v486_v22, 2  ;;  %v566_v29 = vadd.f32 %v562_v24, %v358_v53 }
 0x15e   :  { %v3433_v30 = vsel %vm597_vm0, %v587_v10, %v588_v20  ;;  %v561_v31 = vsel %vm548_vm1, %v532_v13, %v533_v26 }
 0x15f   :  { %v3440_v33 = vsel %vm597_vm0, %v586_v27, %v587_v10  ;;  %v608_v34 = vsel %vm597_vm0, %v585_v15, %v586_v27  ;;  %v615_v36 = vadd.f32 %v611_v2, %v566_v29  ;;  %v567_v37 = vadd.f32 %v561_v31, %v364_v7 }
 0x160   :  { %v374_v40 = vpop.f32.mrb[8].mxu0 }
 0x161   :  { %v2784_v42 = vpop.f32.mrb[8].mxu1  ;;  %v634_v43 = vsel %vm632_vm2, %v615_v36, -inf  ;;  %v616_v44 = vadd.f32 %v610_v63, %v567_v37  ;;  %v376_v46 = vpop.f32.mrb[9].mxu0 }
 0x162   :  { %v591_v45 = vrot.slane %v2784_v42, 2  ;;  %v499_v18 = vpop.f32.mrb[9].mxu1  ;;  %v649_v28 = vmax.f32 %v614_v9, %v634_v43  ;;  %v534_v32 = vrot.slane %v376_v46, 1  ;;  %v378_v48 = vpop.f32.mrb[10].mxu0 }
 0x163   :  { %v589_v41 = vrot.slane %v499_v18, 2  ;;  %v2785_v49 = vpop.f32.mrb[10].mxu1  ;;  %v380_v53 = vpop.f32.mrb[11].mxu0 }
 0x164   :  { %v592_v47 = vrot.slane %v2785_v49, 2  ;;  %v502_v54 = vpop.f32.mrb[11].mxu1  ;;  %v650_v56 = vrot.slane %v649_v28, 4  ;;  %v560_v57 = vsel %vm548_vm1, %v533_v26, %v534_v32  ;;  %v535_v59 = vrot.slane %v380_v53, 1 }
 0x165   :  { %v3450_v58 = vsel %vm597_vm0, %v588_v20, %v589_v41  ;;  %v568_v61 = vadd.f32 %v560_v57, %v368_v16  ;;  %v590_v63 = vrot.slane %v502_v54, 2 }
 0x166   :  { %v3454_v62 = vsel %vm597_vm0, %v591_v45, %v592_v47  ;;  %v651_v1 = vmax.f32 %v649_v28, %v650_v56  ;;  %v559_v2 = vsel %vm548_vm1, %v534_v32, %v535_v59 }
 0x167   :  { %v617_v4 = vadd.f32 %v609_v25, %v568_v61  ;;  %v569_v5 = vadd.f32 %v559_v2, %v374_v40  ;;  %v3460_v6 = vsel %vm597_vm0, %v590_v63, %v591_v45  ;;  %v3464_v7 = vsel %vm597_vm0, %v589_v41, %v590_v63 }
 0x168   :  { %v652_v9 = vrot.slane %v651_v1, 2  ;;  %v384_v10 = vpop.f32.mrb[12].mxu0 }
 0x169   :  { %v2788_v11 = vpop.f32.mrb[12].mxu1  ;;  %v636_v12 = vsel %vm632_vm2, %v617_v4, -inf  ;;  %v618_v13 = vadd.f32 %v608_v34, %v569_v5  ;;  %v386_v16 = vpop.f32.mrb[13].mxu0 }
 0x16a   :  { %v595_v15 = vrot.slane %v2788_v11, 2  ;;  %v515_v17 = vpop.f32.mrb[13].mxu1  ;;  %v656_v19 = vmax.f32 %v616_v44, %v636_v12  ;;  %v536_v20 = vrot.slane %v386_v16, 1  ;;  %v388_v22 = vpop.f32.mrb[14].mxu0  ;;  %v653_v27 = vmax.f32 %v651_v1, %v652_v9 }
 0x16b   :  { %v593_v21 = vrot.slane %v515_v17, 2  ;;  %v2789_v23 = vpop.f32.mrb[14].mxu1  ;;  %v390_v25 = vpop.f32.mrb[15].mxu0 }
 0x16c   :  { %v596_v24 = vrot.slane %v2789_v23, 2  ;;  %v518_v26 = vpop.f32.mrb[15].mxu1  ;;  %v657_v29 = vrot.slane %v656_v19, 4  ;;  %v558_v31 = vsel %vm548_vm1, %v535_v59, %v536_v20  ;;  %v537_v39 = vrot.slane %v390_v25, 1 }
 0x16d   :  { %v3472_v34 = vsel %vm597_vm0, %v592_v47, %v593_v21  ;;  %v570_v35 = vadd.f32 %v558_v31, %v378_v48  ;;  %v594_v42 = vrot.slane %v518_v26, 2  ;;  %v654_v32 = vrot.slane %v653_v27, 1 }
 0x16e   :  { %v3476_v36 = vsel %vm597_vm0, %v595_v15, %v596_v24  ;;  %v3482_v37 = vsel %vm597_vm0, %v596_v24, %v581_v52  ;;  %v658_v40 = vmax.f32 %v656_v19, %v657_v29  ;;  %v557_v44 = vsel %vm548_vm1, %v536_v20, %v537_v39 }
 0x16f   :  { %v619_v43 = vadd.f32 %v3440_v33, %v570_v35  ;;  %v571_v46 = vadd.f32 %v557_v44, %v384_v10  ;;  %v3489_v18 = vsel %vm597_vm0, %v594_v42, %v595_v15  ;;  %v3493_v50 = vsel %vm597_vm0, %v593_v21, %v594_v42 }
 0x170   :  { %v659_v45 = vrot.slane %v658_v40, 2  ;;  %v394_v52 = vpop.f32.mrb[16].mxu0  ;;  %v655_v5 = vmax.f32 %v653_v27, %v654_v32 }
 0x171   :  { %v931_v28 = vpop.f32.mrb[16].mxu1  ;;  %v638_v41 = vsel %vm632_vm2, %v619_v43, -inf  ;;  %v396_v33 = vpop.f32.mrb[17].mxu0  ;;  %v620_v47 = vadd.f32 %v3433_v30, %v571_v46 }
 0x172   :  { %v3497_v48 = vpop.f32.mrb[17].mxu1  ;;  %v660_v49 = vmax.f32 %v658_v40, %v659_v45  ;;  %v663_v51 = vmax.f32 %v618_v13, %v638_v41  ;;  %v538_v53 = vrot.slane %v396_v33, 1  ;;  %v398_v54 = vpop.f32.mrb[18].mxu0 }
 0x173   :  { %v935_v55 = vpop.f32.mrb[18].mxu1  ;;  %v1123_v56 = vrot.slane %v3497_v48, 1  ;;  %v400_v57 = vpop.f32.mrb[19].mxu0 }
 0x174   :  { %v937_v59 = vpop.f32.mrb[19].mxu1  ;;  %v661_v61 = vrot.slane %v660_v49, 1  ;;  %v664_v63 = vrot.slane %v663_v51, 4  ;;  %v556_v1 = vsel %vm548_vm1, %v537_v39, %v538_v53  ;;  %v539_v2 = vrot.slane %v400_v57, 1 }
 0x175   :  { %v572_v3 = vadd.f32 %v556_v1, %v388_v22  ;;  %v1124_v4 = vrot.slane %v937_v59, 1 }
 0x176   :  { %v662_v8 = vmax.f32 %v660_v49, %v661_v61  ;;  %v665_v9 = vmax.f32 %v663_v51, %v664_v63  ;;  %v555_v30 = vsel %vm548_vm1, %v538_v53, %v539_v2 }
 0x177   :  { %v621_v10 = vadd.f32 %v3450_v58, %v572_v3  ;;  %v573_v11 = vadd.f32 %v555_v30, %v394_v52  ;;  %v1153_v12 = vsel %vm548_vm1, %v1123_v56, %v1124_v4 }
 0x178   :  { %v2197_v13 = vsel %vm2196_vm3, %v662_v8, %v655_v5  ;;  %v666_v15 = vrot.slane %v665_v9, 2  ;;  %v3511_v16 = vadd.f32 %v1153_v12, %v931_v28  ;;  %v404_v17 = vpop.f32.mrb[20].mxu0 }
 0x179   :  { %v941_v19 = vpop.f32.mrb[20].mxu1  ;;  %v640_v20 = vsel %vm632_vm2, %v621_v10, -inf  ;;  %v622_v21 = vadd.f32 %v3464_v7, %v573_v11  ;;  %v406_v22 = vpop.f32.mrb[21].mxu0 }
 0x17a   :  { %v943_v58 = vpop.f32.mrb[21].mxu1  ;;  %v667_v23 = vmax.f32 %v665_v9, %v666_v15  ;;  %v670_v24 = vmax.f32 %v620_v47, %v640_v20  ;;  %v540_v25 = vrot.slane %v406_v22, 1  ;;  %v408_v27 = vpop.f32.mrb[22].mxu0 }
 0x17b   :  { %v1125_v26 = vrot.slane %v943_v58, 1  ;;  %v945_v29 = vpop.f32.mrb[22].mxu1  ;;  %v410_v31 = vpop.f32.mrb[23].mxu0 }
 0x17c   :  { %v947_v35 = vpop.f32.mrb[23].mxu1  ;;  %v668_v39 = vrot.slane %v667_v23, 1  ;;  %v671_v40 = vrot.slane %v670_v24, 4  ;;  %v554_v42 = vsel %vm548_vm1, %v539_v2, %v540_v25  ;;  %v541_v45 = vrot.slane %v410_v31, 1 }
 0x17d   :  { %v1152_v43 = vsel %vm548_vm1, %v1124_v4, %v1125_v26  ;;  %v574_v7 = vadd.f32 %v554_v42, %v398_v54  ;;  %v1126_v46 = vrot.slane %v947_v35, 1 }
 0x17e   :  { %v3520_v44 = vadd.f32 %v1152_v43, %v935_v55  ;;  %v669_v52 = vmax.f32 %v667_v23, %v668_v39  ;;  %v672_v28 = vmax.f32 %v670_v24, %v671_v40  ;;  %v553_v41 = vsel %vm548_vm1, %v540_v25, %v541_v45 }
 0x17f   :  { %v623_v32 = vadd.f32 %v3460_v6, %v574_v7  ;;  %v1151_v33 = vsel %vm548_vm1, %v1125_v26, %v1126_v46  ;;  %v575_v51 = vadd.f32 %v553_v41, %v404_v17 }
 0x180   :  { %v673_v49 = vrot.slane %v672_v28, 2  ;;  %v3527_v47 = vadd.f32 %v1151_v33, %v941_v19  ;;  %v414_v53 = vpop.f32.mrb[24].mxu0  ;;  %v2199_v55 = vsel %vm2198_vm4, %v669_v52, %v2197_v13 }
 0x181   :  { %v951_v54 = vpop.f32.mrb[24].mxu1  ;;  %v642_v57 = vsel %vm632_vm2, %v623_v32, -inf  ;;  %v416_v59 = vpop.f32.mrb[25].mxu0  ;;  %v624_v1 = vadd.f32 %v3454_v62, %v575_v51 }
 0x182   :  { %v953_v61 = vpop.f32.mrb[25].mxu1  ;;  %v674_v6 = vmax.f32 %v672_v28, %v673_v49  ;;  %v677_v63 = vmax.f32 %v622_v21, %v642_v57  ;;  %v542_v2 = vrot.slane %v416_v59, 1  ;;  %v418_v3 = vpop.f32.mrb[26].mxu0 }
 0x183   :  { %v955_v4 = vpop.f32.mrb[26].mxu1  ;;  %v1127_v5 = vrot.slane %v953_v61, 1  ;;  %v420_v8 = vpop.f32.mrb[27].mxu0 }
 0x184   :  { %v957_v9 = vpop.f32.mrb[27].mxu1  ;;  %v675_v30 = vrot.slane %v674_v6, 1  ;;  %v678_v10 = vrot.slane %v677_v63, 4  ;;  %v552_v11 = vsel %vm548_vm1, %v541_v45, %v542_v2  ;;  %v543_v12 = vrot.slane %v420_v8, 1 }
 0x185   :  { %v576_v13 = vadd.f32 %v552_v11, %v408_v27  ;;  %v1150_v15 = vsel %vm548_vm1, %v1126_v46, %v1127_v5  ;;  %v1128_v17 = vrot.slane %v957_v9, 1 }
 0x186   :  { %v676_v19 = vmax.f32 %v674_v6, %v675_v30  ;;  %v679_v62 = vmax.f32 %v677_v63, %v678_v10  ;;  %v3537_v20 = vadd.f32 %v1150_v15, %v945_v29  ;;  %v551_v21 = vsel %vm548_vm1, %v542_v2, %v543_v12 }
 0x187   :  { %v625_v22 = vadd.f32 %v3472_v34, %v576_v13  ;;  %v577_v58 = vadd.f32 %v551_v21, %v414_v53  ;;  %v1149_v23 = vsel %vm548_vm1, %v1127_v5, %v1128_v17 }
 0x188   :  { %v680_v24 = vrot.slane %v679_v62, 2  ;;  %v3544_v25 = vadd.f32 %v1149_v23, %v951_v54  ;;  %v424_v26 = vpop.f32.mrb[28].mxu0  ;;  %v2201_v31 = vsel %vm2200_vm5, %v676_v19, %v2199_v55  ;;  %v3181_v19 = vmov 0.0  }
 0x189   :  { %v961_v27 = vpop.f32.mrb[28].mxu1  ;;  %v644_v29 = vsel %vm632_vm2, %v625_v22, -inf  ;;  %v626_v35 = vadd.f32 %v3493_v50, %v577_v58  ;;  %v426_v39 = vpop.f32.mrb[29].mxu0  ;;  %2822 = vmatprep.subr.bf16.mxu1 %v3181_v19  ;;  %2838 = vmatprep.mubr.msk.bf16.mxu1 %vm3182_vm12, %v3181_v19 }
 0x18a   :  { %v963_v40 = vpop.f32.mrb[29].mxu1  ;;  %v681_v42 = vmax.f32 %v679_v62, %v680_v24  ;;  %v684_v34 = vmax.f32 %v624_v1, %v644_v29  ;;  %v544_v43 = vrot.slane %v426_v39, 1  ;;  %v428_v45 = vpop.f32.mrb[30].mxu0  ;;  %v3019_v24 = vld [vmem:[#allocation10 + $0x80] sm:$0xff]  }
 0x18b   :  { %v1129_v7 = vrot.slane %v963_v40, 1  ;;  %v965_v46 = vpop.f32.mrb[30].mxu1  ;;  %v430_v52 = vpop.f32.mrb[31].mxu0  ;;  %2823 = vmatpush3.bf16.msra.mxu1 %v3019_v24 }
 0x18c   :  { %v967_v28 = vpop.f32.mrb[31].mxu1  ;;  %v682_v32 = vrot.slane %v681_v42, 1  ;;  %v685_v41 = vrot.slane %v684_v34, 4  ;;  %v550_v33 = vsel %vm548_vm1, %v543_v12, %v544_v43  ;;  %v545_v53 = vrot.slane %v430_v52, 1  ;;  %2824 = vmatprep.subr.bf16.mxu1 %v3181_v19 }
 0x18d   :  { %v1148_v49 = vsel %vm548_vm1, %v1128_v17, %v1129_v7  ;;  %v578_v50 = vadd.f32 %v550_v33, %v418_v3  ;;  %v1130_v54 = vrot.slane %v967_v28, 1  ;;  %v3020_v28 = vld [vmem:[#allocation10 + $0x88] sm:$0xff]  }
 0x18e   :  { %v3554_v51 = vadd.f32 %v1148_v49, %v955_v4  ;;  %v683_v55 = vmax.f32 %v681_v42, %v682_v32  ;;  %v686_v57 = vmax.f32 %v684_v34, %v685_v41  ;;  %v549_v61 = vsel %vm548_vm1, %v544_v43, %v545_v53 }
 0x18f   :  { %v627_v59 = vadd.f32 %v3489_v18, %v578_v50  ;;  %v564_v6 = vsel %vm548_vm1, %v545_v53, %v530_v60  ;;  %v1147_v63 = vsel %vm548_vm1, %v1129_v7, %v1130_v54  ;;  %v579_v2 = vadd.f32 %v549_v61, %v424_v26  ;;  %2825 = vmatpush3.bf16.msra.mxu1 %v3020_v28 }
 0x190   :  { %v687_v1 = vrot.slane %v686_v57, 2  ;;  %v580_v3 = vadd.f32 %v564_v6, %v428_v45  ;;  %v3566_v4 = vadd.f32 %v1147_v63, %v961_v27  ;;  %v3568_v8 = vpop.f32.mrb[32].mxu0  ;;  %v2203_v60 = vsel %vm2202_vm6, %v683_v55, %v2201_v31  ;;  %2826 = vmatprep.subr.bf16.mxu1 %v3181_v19 }
 0x191   :  { %v971_v5 = vpop.f32.mrb[32].mxu1  ;;  %v646_v18 = vsel %vm632_vm2, %v627_v59, -inf  ;;  %v1171_v9 = vrot.slane %v3568_v8, 2  ;;  %v3573_v30 = vpop.f32.mrb[33].mxu0  ;;  %v628_v12 = vadd.f32 %v3476_v36, %v579_v2 }
 0x192   :  { %v973_v0 = vpop.f32.mrb[33].mxu1  ;;  %v688_v10 = vmax.f32 %v686_v57, %v687_v1  ;;  %v691_v11 = vmax.f32 %v626_v35, %v646_v18  ;;  %v629_v13 = vadd.f32 %v3482_v37, %v580_v3  ;;  %v1048_v17 = vpop.f32.mrb[34].mxu0  ;;  %v1219_v21 = vrot.slane %v3573_v30, 3 }
 0x193   :  { %v975_v15 = vpop.f32.mrb[34].mxu1  ;;  %v1131_v62 = vrot.slane %v973_v0, 1  ;;  %v1172_v22 = vrot.slane %v1048_v17, 2  ;;  %v1050_v23 = vpop.f32.mrb[35].mxu0  ;;  %v3021_v0 = vld [vmem:[#allocation10 + $0x90] sm:$0xff]  }
 0x194   :  { %v977_v58 = vpop.f32.mrb[35].mxu1  ;;  %v689_v26 = vrot.slane %v688_v10, 1  ;;  %v692_v27 = vrot.slane %v691_v11, 4  ;;  %v648_v31 = vsel %vm632_vm2, %v629_v13, -inf  ;;  %v1220_v39 = vrot.slane %v1050_v23, 3  ;;  %2827 = vmatpush3.bf16.msra.mxu1 %v3021_v0 }
 0x195   :  { %v1132_v36 = vrot.slane %v977_v58, 1  ;;  %v698_v29 = vmax.f32 %v628_v12, %v648_v31  ;;  %v1146_v37 = vsel %vm548_vm1, %v1130_v54, %v1131_v62  ;;  %v1201_v35 = vsel %vm597_vm0, %v1171_v9, %v1172_v22  ;;  %2828 = vmatprep.subr.bf16.mxu1 %v3181_v19  ;;  %v3022_v31 = vld [vmem:[#allocation10 + $0x98] sm:$0xff]  }
 0x196   :  { %v690_v40 = vmax.f32 %v688_v10, %v689_v26  ;;  %v693_v42 = vmax.f32 %v691_v11, %v692_v27  ;;  %v3588_v34 = vadd.f32 %v1146_v37, %v965_v46  ;;  %v1203_v43 = vadd.f32 %v1201_v35, %v3511_v16 }
 0x197   :  { %v699_v7 = vrot.slane %v698_v29, 4  ;;  %v1145_v45 = vsel %vm548_vm1, %v1131_v62, %v1132_v36  ;;  %v1250_v52 = vsel %vm1235_vm7, %v1219_v21, %v1220_v39 }
 0x198   :  { %v694_v32 = vrot.slane %v693_v42, 2  ;;  %v3598_v41 = vadd.f32 %v1145_v45, %v971_v5  ;;  %v1252_v33 = vadd.f32 %v1250_v52, %v1203_v43  ;;  %v1054_v49 = vpop.f32.mrb[36].mxu0  ;;  %v2205_v16 = vsel %vm2204_vm8, %v690_v40, %v2203_v60  ;;  %2829 = vmatpush3.bf16.msra.mxu1 %v3022_v31 }
 0x199   :  { %v981_v46 = vpop.f32.mrb[36].mxu1  ;;  %v700_v50 = vmax.f32 %v698_v29, %v699_v7  ;;  %v1173_v53 = vrot.slane %v1054_v49, 2  ;;  %v1056_v55 = vpop.f32.mrb[37].mxu0  ;;  %2830 = vmatprep.subr.bf16.mxu1 %v3181_v19 }
 0x19a   :  { %v983_v54 = vpop.f32.mrb[37].mxu1  ;;  %v695_v57 = vmax.f32 %v693_v42, %v694_v32  ;;  %v1221_v61 = vrot.slane %v1056_v55, 3  ;;  %v1058_v63 = vpop.f32.mrb[38].mxu0  ;;  %v3023_v55 = vld [vmem:[#allocation10 + $0xa0] sm:$0xff]  }
 0x19b   :  { %v1133_v59 = vrot.slane %v983_v54, 1  ;;  %v985_v6 = vpop.f32.mrb[38].mxu1  ;;  %v701_v1 = vrot.slane %v700_v50, 2  ;;  %v1200_v2 = vsel %vm597_vm0, %v1172_v22, %v1173_v53  ;;  %v1174_v3 = vrot.slane %v1058_v63, 2  ;;  %v1060_v18 = vpop.f32.mrb[39].mxu0 }
 0x19c   :  { %v987_v5 = vpop.f32.mrb[39].mxu1  ;;  %v696_v60 = vrot.slane %v695_v57, 1  ;;  %v1204_v10 = vadd.f32 %v1200_v2, %v3520_v44  ;;  %v1249_v12 = vsel %vm1235_vm7, %v1220_v39, %v1221_v61  ;;  %v1222_v26 = vrot.slane %v1060_v18, 3  ;;  %2831 = vmatpush3.bf16.msra.mxu1 %v3023_v55 }
 0x19d   :  { %v1144_v11 = vsel %vm548_vm1, %v1132_v36, %v1133_v59  ;;  %v702_v13 = vmax.f32 %v700_v50, %v701_v1  ;;  %v1199_v62 = vsel %vm597_vm0, %v1173_v53, %v1174_v3  ;;  %v1134_v22 = vrot.slane %v987_v5, 1  ;;  %2832 = vmatprep.subr.bf16.mxu1 %v3181_v19 }
 0x19e   :  { %v3610_v17 = vadd.f32 %v1144_v11, %v975_v15  ;;  %v697_v58 = vmax.f32 %v695_v57, %v696_v60  ;;  %v1253_v23 = vadd.f32 %v1249_v12, %v1204_v10  ;;  %v1205_v24 = vadd.f32 %v1199_v62, %v3527_v47  ;;  %v3024_v11 = vld [vmem:[#allocation10 + $0xa8] sm:$0xff]  }
 0x19f   :  { %v703_v44 = vrot.slane %v702_v13, 1  ;;  %v1143_v27 = vsel %vm548_vm1, %v1133_v59, %v1134_v22  ;;  %v1248_v29 = vsel %vm1235_vm7, %v1221_v61, %v1222_v26 }
 0x1a0   :  { %v1271_v15 = vsel %vm1269_vm9, %v1253_v23, -inf  ;;  %v3620_v36 = vadd.f32 %v1143_v27, %v981_v46  ;;  %v1064_v35 = vpop.f32.mrb[40].mxu0  ;;  %v2207_v47 = vsel %vm2206_vm10, %v697_v58, %v2205_v16  ;;  %v1254_v40 = vadd.f32 %v1248_v29, %v1205_v24  ;;  %2833 = vmatpush3.bf16.msra.mxu1 %v3024_v11 }
 0x1a1   :  { %v991_v37 = vpop.f32.mrb[40].mxu1  ;;  %v1286_v39 = vmax.f32 %v1252_v33, %v1271_v15  ;;  %v1175_v42 = vrot.slane %v1064_v35, 2  ;;  %v1066_v7 = vpop.f32.mrb[41].mxu0  ;;  %v704_v45 = vmax.f32 %v702_v13, %v703_v44  ;;  %2834 = vmatprep.subr.bf16.mxu1 %v3181_v19 }
 0x1a2   :  { %v993_v43 = vpop.f32.mrb[41].mxu1  ;;  %v1223_v28 = vrot.slane %v1066_v7, 3  ;;  %v1068_v49 = vpop.f32.mrb[42].mxu0 }
 0x1a3   :  { %v1135_v52 = vrot.slane %v993_v43, 1  ;;  %v995_v32 = vpop.f32.mrb[42].mxu1  ;;  %v1287_v46 = vrot.slane %v1286_v39, 4  ;;  %v1198_v50 = vsel %vm597_vm0, %v1174_v3, %v1175_v42  ;;  %v1176_v53 = vrot.slane %v1068_v49, 2  ;;  %v1070_v16 = vpop.f32.mrb[43].mxu0 }
 0x1a4   :  { %v997_v54 = vpop.f32.mrb[43].mxu1  ;;  %v3629_v33 = vsel %vm2208_vm11, %v704_v45, %v2207_v47  ;;  %v1206_v57 = vadd.f32 %v1198_v50, %v3537_v20  ;;  %v1247_v61 = vsel %vm1235_vm7, %v1222_v26, %v1223_v28  ;;  %v1224_v5 = vrot.slane %v1070_v16, 3  ;;  %v3025_v26 = vld [vmem:[#allocation10 + $0xb0] sm:$0xff]  }
 0x1a5   :  { %v1142_v59 = vsel %vm548_vm1, %v1134_v22, %v1135_v52  ;;  %v1136_v63 = vrot.slane %v997_v54, 1  ;;  %v1288_v1 = vmax.f32 %v1286_v39, %v1287_v46  ;;  %v1197_v3 = vsel %vm597_vm0, %v1175_v42, %v1176_v53  ;;  %2835 = vmatpush3.bf16.msra.mxu1 %v3025_v26  ;;  %v3026_v46 = vld [vmem:[#allocation10 + $0xb8] sm:$0xff]  }
 0x1a6   :  { %v3636_v2 = vadd.f32 %v1142_v59, %v985_v6  ;;  %v1255_v18 = vadd.f32 %v1247_v61, %v1206_v57  ;;  %v1207_v0 = vadd.f32 %v1197_v3, %v3544_v25  ;;  %v1246_v6 = vsel %vm1235_vm7, %v1223_v28, %v1224_v5  ;;  %2836 = vmatprep.subr.bf16.mxu1 %v3181_v19 }
 0x1a7   :  { %v1141_v20 = vsel %vm548_vm1, %v1135_v52, %v1136_v63  ;;  %v1289_v60 = vrot.slane %v1288_v1, 2 }
 0x1a8   :  { %v3644_v10 = vadd.f32 %v1141_v20, %v991_v37  ;;  %v1273_v12 = vsel %vm1269_vm9, %v1255_v18, -inf  ;;  %v1256_v13 = vadd.f32 %v1246_v6, %v1207_v0  ;;  %v1074_v22 = vpop.f32.mrb[44].mxu0 }
 0x1a9   :  { %v1001_v62 = vpop.f32.mrb[44].mxu1  ;;  %v1293_v58 = vmax.f32 %v1254_v40, %v1273_v12  ;;  %v1177_v25 = vrot.slane %v1074_v22, 2  ;;  %v1076_v24 = vpop.f32.mrb[45].mxu0  ;;  %v1290_v29 = vmax.f32 %v1288_v1, %v1289_v60  ;;  %2837 = vmatpush3.bf16.msra.mxu1 %v3026_v46 }
 0x1aa   :  { %v1003_v23 = vpop.f32.mrb[45].mxu1  ;;  %v1225_v27 = vrot.slane %v1076_v24, 3  ;;  %v1078_v15 = vpop.f32.mrb[46].mxu0 }
 0x1ab   :  { %v1137_v44 = vrot.slane %v1003_v23, 1  ;;  %v1005_v31 = vpop.f32.mrb[46].mxu1  ;;  %v1294_v37 = vrot.slane %v1293_v58, 4  ;;  %v1196_v35 = vsel %vm597_vm0, %v1176_v53, %v1177_v25  ;;  %v1178_v47 = vrot.slane %v1078_v15, 2  ;;  %v1080_v40 = vpop.f32.mrb[47].mxu0 }
 0x1ac   :  { %v1007_v39 = vpop.f32.mrb[47].mxu1  ;;  %v1208_v42 = vadd.f32 %v1196_v35, %v3554_v51  ;;  %v1245_v7 = vsel %vm1235_vm7, %v1224_v5, %v1225_v27  ;;  %v1226_v57 = vrot.slane %v1080_v40, 3  ;;  %v1291_v59 = vrot.slane %v1290_v29, 1 }
 0x1ad   :  { %v1140_v43 = vsel %vm548_vm1, %v1136_v63, %v1137_v44  ;;  %v1138_v45 = vrot.slane %v1007_v39, 1  ;;  %v1295_v52 = vmax.f32 %v1293_v58, %v1294_v37  ;;  %v1195_v49 = vsel %vm597_vm0, %v1177_v25, %v1178_v47 }
 0x1ae   :  { %v3659_v28 = vadd.f32 %v1140_v43, %v995_v32  ;;  %v1257_v50 = vadd.f32 %v1245_v7, %v1208_v42  ;;  %v1209_v53 = vadd.f32 %v1195_v49, %v3566_v4  ;;  %v1244_v48 = vsel %vm1235_vm7, %v1225_v27, %v1226_v57 }
 0x1af   :  { %v1139_v51 = vsel %vm548_vm1, %v1137_v44, %v1138_v45  ;;  %v1154_v54 = vsel %vm548_vm1, %v1138_v45, %v1123_v56  ;;  %v1296_v32 = vrot.slane %v1295_v52, 2  ;;  %v1292_v44 = vmax.f32 %v1290_v29, %v1291_v59 }
 0x1b0   :  { %v3671_v16 = vadd.f32 %v1139_v51, %v1001_v62  ;;  %v3673_v55 = vadd.f32 %v1154_v54, %v1005_v31  ;;  %v1275_v4 = vsel %vm1269_vm9, %v1257_v50, -inf  ;;  %v1084_v61 = vpop.f32.mrb[48].mxu0  ;;  %v1258_v18 = vadd.f32 %v1244_v48, %v1209_v53 }
 0x1b1   :  { %v1632_v63 = vpop.f32.mrb[48].mxu1  ;;  %v1297_v1 = vmax.f32 %v1295_v52, %v1296_v32  ;;  %v1300_v3 = vmax.f32 %v1256_v13, %v1275_v4  ;;  %v1179_v56 = vrot.slane %v1084_v61, 2  ;;  %v1086_v5 = vpop.f32.mrb[49].mxu0 }
 0x1b2   :  { %v3679_v19 = vpop.f32.mrb[49].mxu1  ;;  %v1227_v0 = vrot.slane %v1086_v5, 3  ;;  %v1088_v60 = vpop.f32.mrb[50].mxu0 }
 0x1b3   :  { %v1921_v20 = vrot.slane %v3679_v19, 1  ;;  %v1636_v6 = vpop.f32.mrb[50].mxu1  ;;  %v1298_v11 = vrot.slane %v1297_v1, 1  ;;  %v1301_v12 = vrot.slane %v1300_v3, 4  ;;  %v1194_v62 = vsel %vm597_vm0, %v1178_v47, %v1179_v56  ;;  %v1090_v22 = vpop.f32.mrb[51].mxu0 }
 0x1b4   :  { %v1180_v13 = vrot.slane %v1088_v60, 2  ;;  %v1638_v58 = vpop.f32.mrb[51].mxu1  ;;  %v1210_v25 = vadd.f32 %v1194_v62, %v3588_v34  ;;  %v1243_v23 = vsel %vm1235_vm7, %v1226_v57, %v1227_v0  ;;  %v1228_v24 = vrot.slane %v1090_v22, 3 }
 0x1b5   :  { %v1922_v26 = vrot.slane %v1638_v58, 1  ;;  %v1299_v27 = vmax.f32 %v1297_v1, %v1298_v11  ;;  %v1302_v31 = vmax.f32 %v1300_v3, %v1301_v12 }
 0x1b6   :  { %v1193_v15 = vsel %vm597_vm0, %v1179_v56, %v1180_v13  ;;  %v1259_v37 = vadd.f32 %v1243_v23, %v1210_v25  ;;  %v1242_v47 = vsel %vm1235_vm7, %v1227_v0, %v1228_v24 }
 0x1b7   :  { %v1211_v35 = vadd.f32 %v1193_v15, %v3598_v41  ;;  %v1951_v34 = vsel %vm548_vm1, %v1921_v20, %v1922_v26  ;;  %v1303_v39 = vrot.slane %v1302_v31, 2  ;;  %v2219_v29 = vsel %vm2196_vm3, %v1299_v27, %v1292_v44 }
 0x1b8   :  { %v3696_v40 = vadd.f32 %v1951_v34, %v1632_v63  ;;  %v1277_v42 = vsel %vm1269_vm9, %v1259_v37, -inf  ;;  %v1094_v7 = vpop.f32.mrb[52].mxu0 }
 0x1b9   :  { %v1260_v43 = vadd.f32 %v1242_v47, %v1211_v35  ;;  %v1642_v45 = vpop.f32.mrb[52].mxu1  ;;  %v1304_v41 = vmax.f32 %v1302_v31, %v1303_v39  ;;  %v1307_v52 = vmax.f32 %v1258_v18, %v1277_v42  ;;  %v1181_v49 = vrot.slane %v1094_v7, 2  ;;  %v1096_v46 = vpop.f32.mrb[53].mxu0 }
 0x1ba   :  { %v1644_v50 = vpop.f32.mrb[53].mxu1  ;;  %v1229_v53 = vrot.slane %v1096_v46, 3  ;;  %v1098_v54 = vpop.f32.mrb[54].mxu0 }
 0x1bb   :  { %v1923_v51 = vrot.slane %v1644_v50, 1  ;;  %v1646_v32 = vpop.f32.mrb[54].mxu1  ;;  %v1305_v57 = vrot.slane %v1304_v41, 1  ;;  %v1308_v59 = vrot.slane %v1307_v52, 4  ;;  %v1192_v4 = vsel %vm597_vm0, %v1180_v13, %v1181_v49  ;;  %v1100_v63 = vpop.f32.mrb[55].mxu0 }
 0x1bc   :  { %v1182_v61 = vrot.slane %v1098_v54, 2  ;;  %v1648_v1 = vpop.f32.mrb[55].mxu1  ;;  %v1212_v3 = vadd.f32 %v1192_v4, %v3610_v17  ;;  %v1241_v48 = vsel %vm1235_vm7, %v1228_v24, %v1229_v53  ;;  %v1230_v5 = vrot.slane %v1100_v63, 3 }
 0x1bd   :  { %v1950_v56 = vsel %vm548_vm1, %v1922_v26, %v1923_v51  ;;  %v1306_v18 = vmax.f32 %v1304_v41, %v1305_v57  ;;  %v1309_v0 = vmax.f32 %v1307_v52, %v1308_v59  ;;  %v1924_v13 = vrot.slane %v1648_v1, 1 }
 0x1be   :  { %v3708_v60 = vadd.f32 %v1950_v56, %v1636_v6  ;;  %v1191_v11 = vsel %vm597_vm0, %v1181_v49, %v1182_v61  ;;  %v1261_v12 = vadd.f32 %v1241_v48, %v1212_v3  ;;  %v1240_v17 = vsel %vm1235_vm7, %v1229_v53, %v1230_v5 }
 0x1bf   :  { %v1213_v62 = vadd.f32 %v1191_v11, %v3620_v36  ;;  %v1310_v22 = vrot.slane %v1309_v0, 2  ;;  %v2220_v58 = vsel %vm2198_vm4, %v1306_v18, %v2219_v29  ;;  %v1949_v6 = vsel %vm548_vm1, %v1923_v51, %v1924_v13 }
 0x1c0   :  { %v1279_v25 = vsel %vm1269_vm9, %v1261_v12, -inf  ;;  %v1104_v24 = vpop.f32.mrb[56].mxu0  ;;  %v3720_v31 = vadd.f32 %v1949_v6, %v1642_v45 }
 0x1c1   :  { %v1262_v23 = vadd.f32 %v1240_v17, %v1213_v62  ;;  %v1652_v26 = vpop.f32.mrb[56].mxu1  ;;  %v1311_v44 = vmax.f32 %v1309_v0, %v1310_v22  ;;  %v1314_v27 = vmax.f32 %v1260_v43, %v1279_v25  ;;  %v1183_v36 = vrot.slane %v1104_v24, 2  ;;  %v1106_v15 = vpop.f32.mrb[57].mxu0 }
 0x1c2   :  { %v1654_v37 = vpop.f32.mrb[57].mxu1  ;;  %v1231_v35 = vrot.slane %v1106_v15, 3  ;;  %v1108_v34 = vpop.f32.mrb[58].mxu0 }
 0x1c3   :  { %v1925_v47 = vrot.slane %v1654_v37, 1  ;;  %v1656_v39 = vpop.f32.mrb[58].mxu1  ;;  %v1312_v29 = vrot.slane %v1311_v44, 1  ;;  %v1315_v42 = vrot.slane %v1314_v27, 4  ;;  %v1190_v7 = vsel %vm597_vm0, %v1182_v61, %v1183_v36  ;;  %v1110_v52 = vpop.f32.mrb[59].mxu0 }
 0x1c4   :  { %v1184_v41 = vrot.slane %v1108_v34, 2  ;;  %v1658_v49 = vpop.f32.mrb[59].mxu1  ;;  %v1214_v46 = vadd.f32 %v1190_v7, %v3636_v2  ;;  %v1239_v43 = vsel %vm1235_vm7, %v1230_v5, %v1231_v35  ;;  %v1232_v50 = vrot.slane %v1110_v52, 3 }
 0x1c5   :  { %v1948_v45 = vsel %vm548_vm1, %v1924_v13, %v1925_v47  ;;  %v1313_v53 = vmax.f32 %v1311_v44, %v1312_v29  ;;  %v1316_v51 = vmax.f32 %v1314_v27, %v1315_v42  ;;  %v1926_v61 = vrot.slane %v1658_v49, 1 }
 0x1c6   :  { %v3729_v54 = vadd.f32 %v1948_v45, %v1646_v32  ;;  %v1189_v57 = vsel %vm597_vm0, %v1183_v36, %v1184_v41  ;;  %v1263_v59 = vadd.f32 %v1239_v43, %v1214_v46  ;;  %v1238_v2 = vsel %vm1235_vm7, %v1231_v35, %v1232_v50 }
 0x1c7   :  { %v1215_v4 = vadd.f32 %v1189_v57, %v3644_v10  ;;  %v1317_v63 = vrot.slane %v1316_v51, 2  ;;  %v2221_v1 = vsel %vm2200_vm5, %v1313_v53, %v2220_v58  ;;  %v1947_v32 = vsel %vm548_vm1, %v1925_v47, %v1926_v61 }
 0x1c8   :  { %v1281_v3 = vsel %vm1269_vm9, %v1263_v59, -inf  ;;  %v1114_v56 = vpop.f32.mrb[60].mxu0  ;;  %v3741_v11 = vadd.f32 %v1947_v32, %v1652_v26 }
 0x1c9   :  { %v1264_v48 = vadd.f32 %v1238_v2, %v1215_v4  ;;  %v1662_v5 = vpop.f32.mrb[60].mxu1  ;;  %v1318_v18 = vmax.f32 %v1316_v51, %v1317_v63  ;;  %v1321_v0 = vmax.f32 %v1262_v23, %v1281_v3  ;;  %v1185_v10 = vrot.slane %v1114_v56, 2  ;;  %v1116_v12 = vpop.f32.mrb[61].mxu0 }
 0x1ca   :  { %v1664_v62 = vpop.f32.mrb[61].mxu1  ;;  %v1233_v17 = vrot.slane %v1116_v12, 3  ;;  %v1118_v22 = vpop.f32.mrb[62].mxu0 }
 0x1cb   :  { %v1927_v13 = vrot.slane %v1664_v62, 1  ;;  %v1666_v58 = vpop.f32.mrb[62].mxu1  ;;  %v1319_v25 = vrot.slane %v1318_v18, 1  ;;  %v1322_v6 = vrot.slane %v1321_v0, 4  ;;  %v1188_v24 = vsel %vm597_vm0, %v1184_v41, %v1185_v10  ;;  %v1120_v27 = vpop.f32.mrb[63].mxu0 }
 0x1cc   :  { %v1186_v44 = vrot.slane %v1118_v22, 2  ;;  %v1668_v36 = vpop.f32.mrb[63].mxu1  ;;  %v1216_v15 = vadd.f32 %v1188_v24, %v3659_v28  ;;  %v1237_v23 = vsel %vm1235_vm7, %v1232_v50, %v1233_v17  ;;  %v1234_v37 = vrot.slane %v1120_v27, 3 }
 0x1cd   :  { %v1946_v26 = vsel %vm548_vm1, %v1926_v61, %v1927_v13  ;;  %v1320_v35 = vmax.f32 %v1318_v18, %v1319_v25  ;;  %v1323_v47 = vmax.f32 %v1321_v0, %v1322_v6  ;;  %v1928_v46 = vrot.slane %v1668_v36, 1 }
 0x1ce   :  { %v3750_v34 = vadd.f32 %v1946_v26, %v1656_v39  ;;  %v1187_v29 = vsel %vm597_vm0, %v1185_v10, %v1186_v44  ;;  %v1265_v42 = vadd.f32 %v1237_v23, %v1216_v15  ;;  %v1202_v28 = vsel %vm597_vm0, %v1186_v44, %v1171_v9  ;;  %v3803_v23 = vld [vmem:[%s4041_s4] sm:$0x7] }
 0x1cf   :  { %v1217_v7 = vadd.f32 %v1187_v29, %v3671_v16  ;;  %v1236_v41 = vsel %vm1235_vm7, %v1233_v17, %v1234_v37  ;;  %v1324_v52 = vrot.slane %v1323_v47, 2  ;;  %v1218_v49 = vadd.f32 %v1202_v28, %v3673_v55 }
 0x1d0   :  { %v1251_v39 = vsel %vm1235_vm7, %v1234_v37, %v1219_v21  ;;  %v1283_v8 = vsel %vm1269_vm9, %v1265_v42, -inf  ;;  %v3768_v9 = vpop.f32.mrb[64].mxu0  ;;  %v2222_v16 = vsel %vm2202_vm6, %v1320_v35, %v2221_v1  ;;  %v2247_v50 = vsub.s32 0, %v3402_v38 }
 0x1d1   :  { %v1266_v43 = vadd.f32 %v1236_v41, %v1217_v7  ;;  %v1672_v45 = vpop.f32.mrb[64].mxu1  ;;  %v1325_v53 = vmax.f32 %v1323_v47, %v1324_v52  ;;  %v1328_v51 = vmax.f32 %v1264_v48, %v1283_v8  ;;  %v1267_v55 = vadd.f32 %v1251_v39, %v1218_v49  ;;  %v3774_v21 = vpop.f32.mrb[65].mxu0 }
 0x1d2   :  { %v1945_v30 = vsel %vm548_vm1, %v1927_v13, %v1928_v46  ;;  %v1674_v57 = vpop.f32.mrb[65].mxu1  ;;  %v1969_v4 = vrot.slane %v3768_v9, 2  ;;  %v2017_v61 = vrot.slane %v3774_v21, 3  ;;  %v1749_v1 = vpop.f32.mrb[66].mxu0 }
 0x1d3   :  { %v3776_v59 = vadd.f32 %v1945_v30, %v1662_v5  ;;  %v1929_v2 = vrot.slane %v1674_v57, 1  ;;  %v1676_v63 = vpop.f32.mrb[66].mxu1  ;;  %v1326_v3 = vrot.slane %v1325_v53, 1  ;;  %v1329_v32 = vrot.slane %v1328_v51, 4  ;;  %v1751_v0 = vpop.f32.mrb[67].mxu0 }
 0x1d4   :  { %v1285_v48 = vsel %vm1269_vm9, %v1267_v55, -inf  ;;  %v1970_v56 = vrot.slane %v1749_v1, 2  ;;  %v1678_v18 = vpop.f32.mrb[67].mxu1  ;;  %v2018_v62 = vrot.slane %v1751_v0, 3 }
 0x1d5   :  { %v1335_v10 = vmax.f32 %v1266_v43, %v1285_v48  ;;  %v1944_v5 = vsel %vm548_vm1, %v1928_v46, %v1929_v2  ;;  %v1930_v12 = vrot.slane %v1678_v18, 1  ;;  %v1330_v17 = vmax.f32 %v1328_v51, %v1329_v32 }
 0x1d6   :  { %v3784_v13 = vadd.f32 %v1944_v5, %v1666_v58  ;;  %v1999_v22 = vsel %vm597_vm0, %v1969_v4, %v1970_v56  ;;  %v1327_v25 = vmax.f32 %v1325_v53, %v1326_v3  ;;  %v2047_v27 = vsel %vm1235_vm7, %v2017_v61, %v2018_v62 }
 0x1d7   :  { %v1336_v6 = vrot.slane %v1335_v10, 4  ;;  %v2001_v24 = vadd.f32 %v1999_v22, %v3696_v40  ;;  %v1943_v44 = vsel %vm548_vm1, %v1929_v2, %v1930_v12  ;;  %v1331_v36 = vrot.slane %v1330_v17, 2 }
 0x1d8   :  { %v3797_v58 = vadd.f32 %v1943_v44, %v1672_v45  ;;  %v2223_v15 = vsel %vm2204_vm8, %v1327_v25, %v2222_v16  ;;  %v1755_v35 = vpop.f32.mrb[68].mxu0  ;;  %v2248_v46 = vrot.slane %v3803_v23, %v2247_v50  ;;  %v2251_v51 = vsub.s32 1, %v3402_v38 }
 0x1d9   :  { %v1337_v26 = vmax.f32 %v1335_v10, %v1336_v6  ;;  %v3805_v40 = vadd.f32 %v2047_v27, %v2001_v24  ;;  %v1682_v37 = vpop.f32.mrb[68].mxu1  ;;  %v1332_v47 = vmax.f32 %v1330_v17, %v1331_v36  ;;  %v1971_v29 = vrot.slane %v1755_v35, 2  ;;  %v1757_v28 = vpop.f32.mrb[69].mxu0 }
 0x1da   :  { %v1684_v42 = vpop.f32.mrb[69].mxu1  ;;  %v2019_v52 = vrot.slane %v1757_v28, 3  ;;  %v1759_v39 = vpop.f32.mrb[70].mxu0  ;;  %v2260_v5 = vadd.f32 %v2248_v46, %v3629_v33 }
 0x1db   :  { %v1338_v7 = vrot.slane %v1337_v26, 2  ;;  %v1931_v41 = vrot.slane %v1684_v42, 1  ;;  %v1686_v49 = vpop.f32.mrb[70].mxu1  ;;  %v1998_v8 = vsel %vm597_vm0, %v1970_v56, %v1971_v29  ;;  %v1972_v43 = vrot.slane %v1759_v39, 2  ;;  %v1761_v16 = vpop.f32.mrb[71].mxu0 }
 0x1dc   :  { %v1688_v45 = vpop.f32.mrb[71].mxu1  ;;  %v1333_v53 = vrot.slane %v1332_v47, 1  ;;  %v2002_v30 = vadd.f32 %v1998_v8, %v3708_v60  ;;  %v2046_v2 = vsel %vm1235_vm7, %v2018_v62, %v2019_v52  ;;  %v2020_v32 = vrot.slane %v1761_v16, 3 }
 0x1dd   :  { %v1339_v55 = vmax.f32 %v1337_v26, %v1338_v7  ;;  %v1942_v57 = vsel %vm548_vm1, %v1930_v12, %v1931_v41  ;;  %v1997_v50 = vsel %vm597_vm0, %v1971_v29, %v1972_v43  ;;  %v1932_v3 = vrot.slane %v1688_v45, 1 }
 0x1de   :  { %v3816_v1 = vadd.f32 %v1942_v57, %v1676_v63  ;;  %v3820_v48 = vadd.f32 %v2046_v2, %v2002_v30  ;;  %v2003_v56 = vadd.f32 %v1997_v50, %v3720_v31  ;;  %v1334_v18 = vmax.f32 %v1332_v47, %v1333_v53 }
 0x1df   :  { %v1340_v0 = vrot.slane %v1339_v55, 1  ;;  %v1941_v60 = vsel %vm548_vm1, %v1931_v41, %v1932_v3  ;;  %v2045_v10 = vsel %vm1235_vm7, %v2019_v52, %v2020_v32  ;;  %v2252_v63 = vrot.slane %v3803_v23, %v2251_v51 }
 0x1e0   :  { %v3829_v12 = vadd.f32 %v1941_v60, %v1682_v37  ;;  %v3831_v62 = vadd.f32 %v2045_v10, %v2003_v56  ;;  %v1765_v22 = vpop.f32.mrb[72].mxu0  ;;  %v2224_v31 = vsel %vm2206_vm10, %v1334_v18, %v2223_v15  ;;  %v2263_v7 = vmax.f32 %v2260_v5, 0.0 }
 0x1e1   :  { %v1692_v17 = vpop.f32.mrb[72].mxu1  ;;  %v1341_v25 = vmax.f32 %v1339_v55, %v1340_v0  ;;  %v1973_v6 = vrot.slane %v1765_v22, 2  ;;  %v1767_v44 = vpop.f32.mrb[73].mxu0 }
 0x1e2   :  { %v1694_v24 = vpop.f32.mrb[73].mxu1  ;;  %v2021_v36 = vrot.slane %v1767_v44, 3  ;;  %v1769_v35 = vpop.f32.mrb[74].mxu0  ;;  %v2266_v50 = vpack.c.bf16 %v2263_v7, %v2263_v7 }
 0x1e3   :  { %v1933_v27 = vrot.slane %v1694_v24, 1  ;;  %v1696_v26 = vpop.f32.mrb[74].mxu1  ;;  %v2225_v47 = vsel %vm2208_vm11, %v1341_v25, %v2224_v31  ;;  %v1996_v33 = vsel %vm597_vm0, %v1972_v43, %v1973_v6  ;;  %v1974_v37 = vrot.slane %v1769_v35, 2  ;;  %v1771_v42 = vpop.f32.mrb[75].mxu0 }
 0x1e4   :  { %v1698_v29 = vpop.f32.mrb[75].mxu1  ;;  %v2261_v28 = vadd.f32 %v2252_v63, %v2225_v47  ;;  %v2004_v41 = vadd.f32 %v1996_v33, %v3729_v54  ;;  %v2044_v52 = vsel %vm1235_vm7, %v2020_v32, %v2021_v36  ;;  %v2022_v43 = vrot.slane %v1771_v42, 3 }
 0x1e5   :  { %v1940_v15 = vsel %vm548_vm1, %v1932_v3, %v1933_v27  ;;  %v1934_v39 = vrot.slane %v1698_v29, 1  ;;  %v1995_v8 = vsel %vm597_vm0, %v1973_v6, %v1974_v37 }
 0x1e6   :  { %v3842_v46 = vadd.f32 %v1940_v15, %v1686_v49  ;;  %v2264_v45 = vmax.f32 %v2261_v28, 0.0  ;;  %v3846_v16 = vadd.f32 %v2044_v52, %v2004_v41  ;;  %v2005_v53 = vadd.f32 %v1995_v8, %v3741_v11 }
 0x1e7   :  { %v1939_v54 = vsel %vm548_vm1, %v1933_v27, %v1934_v39  ;;  %v2043_v55 = vsel %vm1235_vm7, %v2021_v36, %v2022_v43 }
 0x1e8   :  { %v3851_v51 = vadd.f32 %v1939_v54, %v1692_v17  ;;  %v2267_v30 = vpack.c.bf16 %v2264_v45, %v2264_v45  ;;  %v3855_v49 = vadd.f32 %v2043_v55, %v2005_v53  ;;  %v1775_v2 = vpop.f32.mrb[76].mxu0 }
 0x1e9   :  { %v1702_v57 = vpop.f32.mrb[76].mxu1  ;;  %v1975_v3 = vrot.slane %v1775_v2, 2  ;;  %v1777_v56 = vpop.f32.mrb[77].mxu0 }
 0x1ea   :  { %2500 = vmatprep.mubr.bf16.mxu0 %v2267_v30  ;;  %v1704_v32 = vpop.f32.mrb[77].mxu1  ;;  %v2023_v11 = vrot.slane %v1777_v56, 3  ;;  %v1779_v60 = vpop.f32.mrb[78].mxu0 }
 0x1eb   :  { %v1935_v18 = vrot.slane %v1704_v32, 1  ;;  %2501 = vmatmul.mubr.bf16.vlgmr.msra.gmra.mrb[96].mxu0 %v2266_v50  ;;  %v1706_v0 = vpop.f32.mrb[78].mxu1  ;;  %v1994_v10 = vsel %vm597_vm0, %v1974_v37, %v1975_v3  ;;  %v1976_v63 = vrot.slane %v1779_v60, 2  ;;  %v1781_v17 = vpop.f32.mrb[79].mxu0 }
 0x1ec   :  { %v1708_v5 = vpop.f32.mrb[79].mxu1  ;;  %v2006_v22 = vadd.f32 %v1994_v10, %v3750_v34  ;;  %v2042_v31 = vsel %vm1235_vm7, %v2022_v43, %v2023_v11  ;;  %v2024_v27 = vrot.slane %v1781_v17, 3 }
 0x1ed   :  { %v1938_v25 = vsel %vm548_vm1, %v1934_v39, %v1935_v18  ;;  %v1936_v6 = vrot.slane %v1708_v5, 1  ;;  %v1993_v44 = vsel %vm597_vm0, %v1975_v3, %v1976_v63 }
 0x1ee   :  { %v3864_v24 = vadd.f32 %v1938_v25, %v1696_v26  ;;  %v3868_v36 = vadd.f32 %v2042_v31, %v2006_v22  ;;  %v2007_v35 = vadd.f32 %v1993_v44, %v3776_v59  ;;  %v2041_v37 = vsel %vm1235_vm7, %v2023_v11, %v2024_v27 }
 0x1ef   :  { %v1937_v34 = vsel %vm548_vm1, %v1935_v18, %v1936_v6  ;;  %v1952_v47 = vsel %vm548_vm1, %v1936_v6, %v1921_v20 }
 0x1f0   :  { %v3877_v33 = vadd.f32 %v1937_v34, %v1702_v57  ;;  %v3879_v26 = vadd.f32 %v1952_v47, %v1706_v0  ;;  %v2055_v29 = vadd.f32 %v2041_v37, %v2007_v35  ;;  %v1785_v42 = vpop.f32.mrb[80].mxu0 }
 0x1f1   :  { %v2808_v28 = vpop.f32.mrb[80].mxu1  ;;  %v1977_v7 = vrot.slane %v1785_v42, 2  ;;  %v1787_v41 = vpop.f32.mrb[81].mxu0 }
 0x1f2   :  { %v2067_v59 = vrot.slane %v2808_v28, 4  ;;  %v3883_v15 = vpop.f32.mrb[81].mxu1  ;;  %v2025_v52 = vrot.slane %v1787_v41, 3  ;;  %v1789_v19 = vpop.f32.mrb[82].mxu0 }
 0x1f3   :  { %v2809_v39 = vpop.f32.mrb[82].mxu1  ;;  %v1992_v20 = vsel %vm597_vm0, %v1976_v63, %v1977_v7  ;;  %v2065_v8 = vrot.slane %v3883_v15, 4  ;;  %v1978_v43 = vrot.slane %v1789_v19, 2  ;;  %v1791_v53 = vpop.f32.mrb[83].mxu0 }
 0x1f4   :  { %v2068_v45 = vrot.slane %v2809_v39, 4  ;;  %v1861_v54 = vpop.f32.mrb[83].mxu1  ;;  %v2008_v55 = vadd.f32 %v1992_v20, %v3784_v13  ;;  %v2040_v30 = vsel %vm1235_vm7, %v2024_v27, %v2025_v52  ;;  %v2026_v57 = vrot.slane %v1791_v53, 3 }
 0x1f5   :  { %v2066_v2 = vrot.slane %v1861_v54, 4  ;;  %v1991_v50 = vsel %vm597_vm0, %v1977_v7, %v1978_v43 }
 0x1f6   :  { %v2094_v3 = vsel %vm2081_vm13, %v2067_v59, %v2068_v45  ;;  %v3896_v32 = vadd.f32 %v2040_v30, %v2008_v55  ;;  %v2009_v56 = vadd.f32 %v1991_v50, %v3797_v58  ;;  %v2039_v13 = vsel %vm1235_vm7, %v2025_v52, %v2026_v57 }
 0x1f7   :  { %v2100_v18 = vadd.f32 %v2094_v3, %v3831_v62  ;;  %v2095_v11 = vsel %vm2081_vm13, %v2066_v2, %v2067_v59  ;;  %v2096_v0 = vsel %vm2081_vm13, %v2065_v8, %v2066_v2 }
 0x1f8   :  { %v3909_v60 = vadd.f32 %v2039_v13, %v2009_v56  ;;  %v2098_v10 = vadd.f32 %v2096_v0, %v3805_v40  ;;  %v2099_v58 = vadd.f32 %v2095_v11, %v3820_v48  ;;  %v1795_v62 = vpop.f32.mrb[84].mxu0 }
 0x1f9   :  { %v2812_v63 = vpop.f32.mrb[84].mxu1  ;;  %v1979_v5 = vrot.slane %v1795_v62, 2  ;;  %v1797_v22 = vpop.f32.mrb[85].mxu0 }
 0x1fa   :  { %v2071_v17 = vrot.slane %v2812_v63, 4  ;;  %v1874_v25 = vpop.f32.mrb[85].mxu1  ;;  %v2117_v31 = vsel %vm2115_vm14, %v2099_v58, -inf  ;;  %v2027_v6 = vrot.slane %v1797_v22, 3  ;;  %v1799_v27 = vpop.f32.mrb[86].mxu0 }
 0x1fb   :  { %v2069_v44 = vrot.slane %v1874_v25, 4  ;;  %v2813_v35 = vpop.f32.mrb[86].mxu1  ;;  %v2132_v34 = vmax.f32 %v2098_v10, %v2117_v31  ;;  %v1990_v47 = vsel %vm597_vm0, %v1978_v43, %v1979_v5  ;;  %v1980_v40 = vrot.slane %v1799_v27, 2  ;;  %v1801_v48 = vpop.f32.mrb[87].mxu0 }
 0x1fc   :  { %v2072_v37 = vrot.slane %v2813_v35, 4  ;;  %v1877_v42 = vpop.f32.mrb[87].mxu1  ;;  %v2010_v28 = vadd.f32 %v1990_v47, %v3816_v1  ;;  %v2038_v7 = vsel %vm1235_vm7, %v2026_v57, %v2027_v6  ;;  %v2028_v41 = vrot.slane %v1801_v48, 3 }
 0x1fd   :  { %v2093_v59 = vsel %vm2081_vm13, %v2068_v45, %v2069_v44  ;;  %v2133_v52 = vrot.slane %v2132_v34, 4  ;;  %v1989_v39 = vsel %vm597_vm0, %v1979_v5, %v1980_v40  ;;  %v2070_v30 = vrot.slane %v1877_v42, 4 }
 0x1fe   :  { %v2101_v19 = vadd.f32 %v2093_v59, %v3846_v16  ;;  %v2090_v20 = vsel %vm2081_vm13, %v2071_v17, %v2072_v37  ;;  %v3927_v43 = vadd.f32 %v2038_v7, %v2010_v28  ;;  %v2011_v1 = vadd.f32 %v1989_v39, %v3829_v12 }
 0x1ff   :  { %v2104_v53 = vadd.f32 %v2090_v20, %v2055_v29  ;;  %v2037_v54 = vsel %vm1235_vm7, %v2027_v6, %v2028_v41  ;;  %v2134_v55 = vmax.f32 %v2132_v34, %v2133_v52  ;;  %v2091_v56 = vsel %vm2081_vm13, %v2070_v30, %v2071_v17 }
 0x200   :  { %v2119_v45 = vsel %vm2115_vm14, %v2101_v19, -inf  ;;  %v2059_v57 = vadd.f32 %v2037_v54, %v2011_v1  ;;  %v1805_v2 = vpop.f32.mrb[88].mxu0  ;;  %v2092_v12 = vsel %vm2081_vm13, %v2069_v44, %v2070_v30  ;;  %v2103_v58 = vadd.f32 %v2091_v56, %v3868_v36 }
 0x201   :  { %v2139_v16 = vmax.f32 %v2100_v18, %v2119_v45  ;;  %v2816_v50 = vpop.f32.mrb[88].mxu1  ;;  %v2135_v3 = vrot.slane %v2134_v55, 2  ;;  %v1981_v29 = vrot.slane %v1805_v2, 2  ;;  %v1807_v13 = vpop.f32.mrb[89].mxu0  ;;  %v2102_v10 = vadd.f32 %v2092_v12, %v3855_v49 }
 0x202   :  { %v1890_v11 = vpop.f32.mrb[89].mxu1  ;;  %v2075_v62 = vrot.slane %v2816_v50, 4  ;;  %v1809_v18 = vpop.f32.mrb[90].mxu0  ;;  %v2029_v17 = vrot.slane %v1807_v13, 3  ;;  %v2121_v27 = vsel %vm2115_vm14, %v2103_v58, -inf }
 0x203   :  { %v2140_v0 = vrot.slane %v2139_v16, 4  ;;  %v3940_v63 = vpop.f32.mrb[90].mxu1  ;;  %v2136_v5 = vmax.f32 %v2134_v55, %v2135_v3  ;;  %v1988_v22 = vsel %vm597_vm0, %v1980_v40, %v1981_v29  ;;  %v2073_v25 = vrot.slane %v1890_v11, 4  ;;  %v1811_v31 = vpop.f32.mrb[91].mxu0 }
 0x204   :  { %v1893_v6 = vpop.f32.mrb[91].mxu1  ;;  %v2012_v49 = vadd.f32 %v1988_v22, %v3842_v46  ;;  %v1982_v35 = vrot.slane %v1809_v18, 2  ;;  %v2146_v34 = vmax.f32 %v2102_v10, %v2121_v27  ;;  %v2036_v47 = vsel %vm1235_vm7, %v2028_v41, %v2029_v17 }
 0x205   :  { %v2141_v44 = vmax.f32 %v2139_v16, %v2140_v0  ;;  %v2137_v36 = vrot.slane %v2136_v5, 1  ;;  %v2089_v48 = vsel %vm2081_vm13, %v2072_v37, %v2073_v25  ;;  %v2076_v19 = vrot.slane %v3940_v63, 4 }
 0x206   :  { %v2060_v42 = vadd.f32 %v2036_v47, %v2012_v49  ;;  %v2105_v28 = vadd.f32 %v2089_v48, %v3896_v32  ;;  %v1987_v7 = vsel %vm597_vm0, %v1981_v29, %v1982_v35  ;;  %v2147_v52 = vrot.slane %v2146_v34, 4 }
 0x207   :  { %v2142_v40 = vrot.slane %v2141_v44, 2  ;;  %v2138_v59 = vmax.f32 %v2136_v5, %v2137_v36  ;;  %v2013_v46 = vadd.f32 %v1987_v7, %v3851_v51  ;;  %v2030_v20 = vrot.slane %v1811_v31, 3 }
 0x208   :  { %v2123_v41 = vsel %vm2115_vm14, %v2105_v28, -inf  ;;  %v2074_v1 = vrot.slane %v1893_v6, 4  ;;  %v1815_v37 = vpop.f32.mrb[92].mxu0  ;;  %v2148_v55 = vmax.f32 %v2146_v34, %v2147_v52  ;;  %v2086_v45 = vsel %vm2081_vm13, %v2075_v62, %v2076_v19 }
 0x209   :  { %v2143_v39 = vmax.f32 %v2141_v44, %v2142_v40  ;;  %v3958_v54 = vpop.f32.mrb[92].mxu1  ;;  %v2153_v32 = vmax.f32 %v2104_v53, %v2123_v41  ;;  %v1983_v30 = vrot.slane %v1815_v37, 2  ;;  %v1817_v16 = vpop.f32.mrb[93].mxu0  ;;  %v2108_v50 = vadd.f32 %v2086_v45, %v2059_v57 }
 0x20a   :  { %v3962_v2 = vpop.f32.mrb[93].mxu1  ;;  %v2035_v3 = vsel %vm1235_vm7, %v2029_v17, %v2030_v20  ;;  %v2087_v56 = vsel %vm2081_vm13, %v2074_v1, %v2075_v62  ;;  %v1819_v12 = vpop.f32.mrb[94].mxu0  ;;  %v2149_v13 = vrot.slane %v2148_v55, 2  ;;  %v2088_v0 = vsel %vm2081_vm13, %v2073_v25, %v2074_v1 }
 0x20b   :  { %v2144_v51 = vrot.slane %v2143_v39, 1  ;;  %v2821_v29 = vpop.f32.mrb[94].mxu1  ;;  %v2154_v11 = vrot.slane %v2153_v32, 4  ;;  %v2061_v53 = vadd.f32 %v2035_v3, %v2013_v46  ;;  %v1821_v10 = vpop.f32.mrb[95].mxu0  ;;  %v2106_v63 = vadd.f32 %v2088_v0, %v3909_v60 }
 0x20c   :  { %v1909_v58 = vpop.f32.mrb[95].mxu1  ;;  %v2107_v57 = vadd.f32 %v2087_v56, %v3927_v43  ;;  %v1986_v5 = vsel %vm597_vm0, %v1982_v35, %v1983_v30  ;;  %v2150_v22 = vmax.f32 %v2148_v55, %v2149_v13  ;;  %v2079_v31 = vrot.slane %v3958_v54, 4 }
 0x20d   :  { %v2145_v18 = vmax.f32 %v2143_v39, %v2144_v51  ;;  %v2155_v62 = vmax.f32 %v2153_v32, %v2154_v11  ;;  %v2014_v17 = vadd.f32 %v1986_v5, %v3864_v24  ;;  %v2031_v44 = vrot.slane %v1817_v16, 3 }
 0x20e   :  { %v2125_v25 = vsel %vm2115_vm14, %v2107_v57, -inf  ;;  %v2077_v27 = vrot.slane %v3962_v2, 4  ;;  %v2151_v60 = vrot.slane %v2150_v22, 1  ;;  %v1984_v36 = vrot.slane %v1819_v12, 2 }
 0x20f   :  { %v2235_v6 = vsel %vm2196_vm3, %v2145_v18, %v2138_v59  ;;  %v2156_v49 = vrot.slane %v2155_v62, 2  ;;  %v2160_v43 = vmax.f32 %v2106_v63, %v2125_v25  ;;  %v2034_v35 = vsel %vm1235_vm7, %v2030_v20, %v2031_v44 }
 0x210   :  { %v2085_v24 = vsel %vm2081_vm13, %v2076_v19, %v2077_v27  ;;  %v2080_v34 = vrot.slane %v2821_v29, 4  ;;  %v2032_v47 = vrot.slane %v1821_v10, 3  ;;  %v2152_v48 = vmax.f32 %v2150_v22, %v2151_v60 }
 0x211   :  { %v2157_v40 = vmax.f32 %v2155_v62, %v2156_v49  ;;  %v2161_v28 = vrot.slane %v2160_v43, 4  ;;  %v2062_v7 = vadd.f32 %v2034_v35, %v2014_v17  ;;  %v2109_v59 = vadd.f32 %v2085_v24, %v2060_v42 }
 0x212   :  { %v1985_v52 = vsel %vm597_vm0, %v1983_v30, %v1984_v36  ;;  %v2000_v46 = vsel %vm597_vm0, %v1984_v36, %v1969_v4  ;;  %v2082_v39 = vsel %vm2081_vm13, %v2079_v31, %v2080_v34  ;;  %v2236_v19 = vsel %vm2198_vm4, %v2152_v48, %v2235_v6 }
 0x213   :  { %v2158_v41 = vrot.slane %v2157_v40, 1  ;;  %v2162_v20 = vmax.f32 %v2160_v43, %v2161_v28  ;;  %v2015_v1 = vadd.f32 %v1985_v52, %v3877_v33  ;;  %v2127_v42 = vsel %vm2115_vm14, %v2109_v59, -inf }
 0x214   :  { %v2016_v37 = vadd.f32 %v2000_v46, %v3879_v26  ;;  %v2097_v9 = vsel %vm2081_vm13, %v2080_v34, %v2065_v8  ;;  %v2033_v4 = vsel %vm1235_vm7, %v2031_v44, %v2032_v47  ;;  %v2167_v32 = vmax.f32 %v2108_v50, %v2127_v42  ;;  %v2670_v46 = vld [vmem:[%s4043_s6] ss:$0 sm:$0xff] }
 0x215   :  { %v2159_v54 = vmax.f32 %v2157_v40, %v2158_v41  ;;  %v2163_v55 = vrot.slane %v2162_v20, 2  ;;  %v2048_v33 = vsel %vm1235_vm7, %v2032_v47, %v2017_v61  ;;  %v2063_v45 = vadd.f32 %v2033_v4, %v2015_v1 }
 0x216   :  { %v2064_v30 = vadd.f32 %v2048_v33, %v2016_v37  ;;  %v2078_v16 = vrot.slane %v1909_v58, 4  ;;  %v2168_v2 = vrot.slane %v2167_v32, 4 }
 0x217   :  { %v2237_v26 = vsel %vm2200_vm5, %v2159_v54, %v2236_v19  ;;  %v2164_v15 = vmax.f32 %v2162_v20, %v2163_v55  ;;  %v2112_v51 = vadd.f32 %v2082_v39, %v2063_v45 }
 0x218   :  { %v2113_v8 = vadd.f32 %v2097_v9, %v2064_v30  ;;  %v2083_v3 = vsel %vm2081_vm13, %v2078_v16, %v2079_v31  ;;  %v2084_v50 = vsel %vm2081_vm13, %v2077_v27, %v2078_v16  ;;  %v2169_v21 = vmax.f32 %v2167_v32, %v2168_v2 }
 0x219   :  { %v2165_v56 = vrot.slane %v2164_v15, 1  ;;  %v2110_v12 = vadd.f32 %v2084_v50, %v2061_v53  ;;  %v2111_v29 = vadd.f32 %v2083_v3, %v2062_v7  ;;  %v2255_v27 = vsub.s32 2, %v3402_v38 }
 0x21a   :  { %v2131_v61 = vsel %vm2115_vm14, %v2113_v8, -inf  ;;  %v2170_v11 = vrot.slane %v2169_v21, 2 }
 0x21b   :  { %v2166_v13 = vmax.f32 %v2164_v15, %v2165_v56  ;;  %v2181_v0 = vmax.f32 %v2112_v51, %v2131_v61  ;;  %v2129_v10 = vsel %vm2115_vm14, %v2111_v29, -inf  ;;  %v2256_v36 = vrot.slane %v3803_v23, %v2255_v27 }
 0x21c   :  { %v2174_v58 = vmax.f32 %v2110_v12, %v2129_v10  ;;  %v2171_v63 = vmax.f32 %v2169_v21, %v2170_v11 }
 0x21d   :  { %v2238_v18 = vsel %vm2202_vm6, %v2166_v13, %v2237_v26  ;;  %v2182_v57 = vrot.slane %v2181_v0, 4 }
 0x21e   :  { %v2175_v5 = vrot.slane %v2174_v58, 4  ;;  %v2172_v22 = vrot.slane %v2171_v63, 1 }
 0x21f   :  { %v2183_v62 = vmax.f32 %v2181_v0, %v2182_v57 }
 0x220   :  { %v2176_v17 = vmax.f32 %v2174_v58, %v2175_v5  ;;  %v2173_v53 = vmax.f32 %v2171_v63, %v2172_v22 }
 0x221   :  { %v2184_v31 = vrot.slane %v2183_v62, 2 }
 0x222   :  { %v2177_v6 = vrot.slane %v2176_v17, 2  ;;  %v2239_v44 = vsel %vm2204_vm8, %v2173_v53, %v2238_v18 }
 0x223   :  { %v2185_v25 = vmax.f32 %v2183_v62, %v2184_v31 }
 0x224   :  { %v2178_v60 = vmax.f32 %v2176_v17, %v2177_v6 }
 0x225   :  { %v2186_v14 = vrot.slane %v2185_v25, 1 }
 0x226   :  { %v2179_v49 = vrot.slane %v2178_v60, 1 }
 0x227   :  { %v2187_v43 = vmax.f32 %v2185_v25, %v2186_v14 }
 0x228   :  { %v2180_v35 = vmax.f32 %v2178_v60, %v2179_v49 }
 0x22a   :  { %v2240_v24 = vsel %vm2206_vm10, %v2180_v35, %v2239_v44 }
 0x22b   :  { %v2241_v34 = vsel %vm2208_vm11, %v2187_v43, %v2240_v24 }
 0x22c   :  { %v2262_v47 = vadd.f32 %v2256_v36, %v2241_v34 }
 0x22e   :  { %v2265_v48 = vmax.f32 %v2262_v47, 0.0 }
 0x230   :  { %v2268_v40 = vpack.c.bf16 %v2265_v48, %v2265_v48 }
 0x232   :  { %2839 = vmatmul.mubr.bf16.vlgmr.msra.gmra.mrb[96].mxu1 %v2268_v40 }
 0x2be   :  { %v2743_v28 = vpop.f32.mrb[96].mxu0 }
 0x2bf   :  { %v2744_v7 = vpop.f32.mrb[97].mxu0 }
 0x2c0   :  { %v2745_v59 = vadd.f32 %v2744_v7, %v2743_v28  ;;  %v2746_v52 = vpop.f32.mrb[98].mxu0 }
 0x2c1   :  { %v2747_v38 = vpop.f32.mrb[99].mxu0 }
 0x2c2   :  { %v2503_v23 = vadd.f32 %v2745_v59, %v2670_v46 }
 0x305   :  { %v2542_v39 = vpop.f32.mrb[96].mxu1 }
 0x306   :  { %v2543_v19 = vadd.f32 %v2542_v39, %v2503_v23  ;;  %v2840_v41 = vpop.f32.mrb[97].mxu1 }
 0x307   :  { %v2545_v20 = vpop.f32.mrb[98].mxu1 }
 0x308   :  { %2548 = vst [vmem:[#allocation11] sm:$0xff] %v2543_v19  ;;  %v2841_v1 = vpop.f32.mrb[99].mxu1 }
 0x309   :  { %3148 = shalt.err (!%p3145_p2)
}
 0x30a   :  { %s3149_s6 = scalar_lea.hbm %s4044_s7, 128 }
 0x30b   :  { %p3150_p3 = scmp.ne.s32.totalorder %s4044_s7, %s3149_s6  ;;  %p3153_p4 = scmp.lt.u32.totalorder %s3149_s6, %s4044_s7 }
 0x30d   :  { %p3155_p5 = pnand %p3153_p4, %p3150_p3 }
 0x30f   :  { %3158 = shalt.err (!%p3155_p5)
}
 0x310   :  { %2558 = dma.vmem_to_hbm [thread:$0]  %s2556_s20, 128, %s4044_s7, [#allocation4]  }
 0x311   :  { %3165 = dma.done.wait [#allocation4], 128  }
 0x312   :  { %3166 = vsyncadd [#allocation4], 4294967168 }
 0x313   :  { %2562 = vsyncpa [#allocation3], 1 }
 0x314   :  { %2563 = vsyncpa [#allocation6], 1 }
 0x315   :  { %2564 = vsyncpa [#allocation9], 1 }
 0x316   :  { %2565 = vsyncpa [#allocation4], 1 }

</bundles_post_ra>
